<compile_context>
chip_gen: v7x
topology: tpu7x:2x2x1
jax: 0.10.0
libtpu: 0.0.40
codegen_flags: <defaults>
</compile_context>

<pallas_src>
import jax
import jax.numpy as jnp
from jax import lax
from jax.experimental import pallas as pl
from jax.experimental.pallas import tpu as pltpu


def _round_up(x, m):
    return (x + m - 1) // m * m


def gerador_kernel(emb_ref, wih_ref, whh_ref, b_ref, wout_ref, bout_ref,
                   probs_ref, hn_ref, cn_ref,
                   xproj_ref, hseq_ref):
    """LSTM recurrence + hoisted output projection + softmax over time.

    emb_ref   : (T*Bp, E)    bf16  time-major embedded inputs (flattened)
    wih_ref   : (E, 4*Hp)    bf16  input->gates weights (gate order i,f,g,o)
    whh_ref   : (Hp, 4*Hp)   bf16  hidden->gates weights
    b_ref     : (1, 4*Hp)    f32   bias_ih + bias_hh (gate-block padded)
    wout_ref  : (Hp, Vp)     bf16  output projection
    bout_ref  : (1, Vp)      f32   output bias
    probs_ref : (T, Bp, Vp)  f32   softmax over the time axis (axis 0 here)
    hn_ref    : (Bp, Hp)     f32   final hidden state
    cn_ref    : (Bp, Hp)     f32   final cell state
    xproj_ref : (T*Bp, 4*Hp) f32   scratch: x @ W_ih^T + b for every step
    hseq_ref  : (T*Bp, Hp)   f32   scratch: h_t for every step
    """
    T, Bp, Vp = probs_ref.shape
    Hp = whh_ref.shape[0]

    # One big MXU matmul for every timestep's input projection (bf16 in, f32 acc).
    xproj_ref[...] = (
        jnp.dot(emb_ref[...], wih_ref[...], preferred_element_type=jnp.float32)
        + b_ref[...])

    whh = whh_ref[...]

    def step(t, carry):
        h, c = carry                                            # (Bp, Hp) f32
        row = pl.multiple_of(t * Bp, Bp)
        gates = (xproj_ref[pl.ds(row, Bp), :]
                 + jnp.dot(h.astype(jnp.bfloat16), whh,
                           preferred_element_type=jnp.float32))  # (Bp, 4Hp) f32
        i_g = jax.nn.sigmoid(gates[:, 0 * Hp:1 * Hp])
        f_g = jax.nn.sigmoid(gates[:, 1 * Hp:2 * Hp])
        g_g = jnp.tanh(gates[:, 2 * Hp:3 * Hp])
        o_g = jax.nn.sigmoid(gates[:, 3 * Hp:4 * Hp])
        c_new = f_g * c + i_g * g_g
        h_new = o_g * jnp.tanh(c_new)
        hseq_ref[pl.ds(row, Bp), :] = h_new     # logits are computed after the loop
        return (h_new, c_new)

    h0 = jnp.zeros((Bp, Hp), jnp.float32)
    c0 = jnp.zeros((Bp, Hp), jnp.float32)
    h_f, c_f = lax.fori_loop(0, T, step, (h0, c0), unroll=True)
    hn_ref[...] = h_f
    cn_ref[...] = c_f

    # Hoisted output projection: one (T*Bp, Hp) @ (Hp, Vp) MXU matmul for all steps.
    logits = (jnp.dot(hseq_ref[...].astype(jnp.bfloat16), wout_ref[...],
                      preferred_element_type=jnp.float32)
              + bout_ref[...])                                  # (T*Bp, Vp) f32
    lg = logits.reshape(T, Bp, Vp)   # splits sublane groups only -> no relayout

    # Softmax over the TIME axis (PyTorch Softmax(dim=1) on a (B, T, V) tensor).
    m = jnp.max(lg, axis=0, keepdims=True)
    e = jnp.exp(lg - m)
    s = jnp.sum(e, axis=0, keepdims=True)
    probs_ref[...] = e / s


def gerador_forward(params, tokens):
    """tokens: (B, T) int32 -> (probs (B,T,V), (h_n (1,B,H), c_n (1,B,H)))."""
    emb_table = params["embedding"]          # (vocab, E)
    w_ih = params["w_ih"]                    # (4H, E)
    w_hh = params["w_hh"]                    # (4H, H)
    b_ih = params["b_ih"]                    # (4H,)
    b_hh = params["b_hh"]                    # (4H,)
    w_out = params["w_out"]                  # (V, H)
    b_out = params["b_out"]                  # (V,)

    B, T = tokens.shape
    E = emb_table.shape[1]
    H = w_hh.shape[1]
    V = w_out.shape[0]

    Bp = _round_up(max(B, 8), 8)     # sublane width
    Hp = _round_up(H, 128)           # lane width -> each gate slice is a whole vreg
    Vp = _round_up(V, 128)           # lane-dense logits/probs stores, full MXU N

    # Glue: time-major token gather (avoids a (B,T,E)->(T,B,E) transpose); batch is
    # padded with token 0 (padded rows are independent and sliced off afterwards).
    # TODO(synk): the embedding gather stays in XLA; an in-kernel DMA gather and a
    # parallel grid over V blocks (v7x 2nd TensorCore) only pay off at larger shapes.
    tok_tm = jnp.zeros((T, Bp), tokens.dtype).at[:, :B].set(tokens.T)
    emb = emb_table[tok_tm].astype(jnp.bfloat16).reshape(T * Bp, E)

    # Gate-blockwise zero padding of the hidden dim H -> Hp. This is exact: padded
    # hidden units see zero weights/bias, so their gates are (0.5, 0.5, 0, 0.5) and
    # their c/h stay identically zero; they never influence real units or logits.
    def pad_gate_blocks(w, k_new):
        k = w.shape[1]
        w4 = w.reshape(4, H, k)
        out = jnp.zeros((4, Hp, k_new), w.dtype).at[:, :H, :k].set(w4)
        return out.reshape(4 * Hp, k_new)

    wih_t = pad_gate_blocks(w_ih, E).T.astype(jnp.bfloat16)     # (E, 4Hp)
    whh_t = pad_gate_blocks(w_hh, Hp).T.astype(jnp.bfloat16)    # (Hp, 4Hp)
    bias = jnp.zeros((4, Hp), jnp.float32).at[:, :H].set(
        (b_ih + b_hh).reshape(4, H)).reshape(1, 4 * Hp)
    wout_t = jnp.zeros((Vp, Hp), jnp.float32).at[:V, :H].set(
        w_out).T.astype(jnp.bfloat16)                           # (Hp, Vp)
    bout = jnp.zeros((1, Vp), jnp.float32).at[0, :V].set(b_out)

    flops = (2 * T * Bp * E * 4 * Hp          # input projection
             + 2 * T * Bp * Hp * 4 * Hp       # recurrent projection
             + 2 * T * Bp * Hp * Vp)          # output projection
    transcendentals = T * Bp * (5 * Hp + Vp)  # sigmoids/tanhs + softmax exp
    bytes_accessed = (emb.size * 2 + wih_t.size * 2 + whh_t.size * 2
                      + bias.size * 4 + wout_t.size * 2 + bout.size * 4
                      + T * Bp * Vp * 4 + 2 * Bp * Hp * 4)

    vmem = pl.BlockSpec(memory_space=pltpu.MemorySpace.VMEM)
    probs_tbv, h_n, c_n = pl.pallas_call(
        gerador_kernel,
        out_shape=(
            jax.ShapeDtypeStruct((T, Bp, Vp), jnp.float32),
            jax.ShapeDtypeStruct((Bp, Hp), jnp.float32),
            jax.ShapeDtypeStruct((Bp, Hp), jnp.float32),
        ),
        in_specs=[vmem] * 6,
        out_specs=(vmem, vmem, vmem),
        scratch_shapes=[
            pltpu.VMEM((T * Bp, 4 * Hp), jnp.float32),   # xproj (all timesteps)
            pltpu.VMEM((T * Bp, Hp), jnp.float32),       # hidden-state sequence
        ],
        cost_estimate=pl.CostEstimate(flops=flops,
                                      transcendentals=transcendentals,
                                      bytes_accessed=bytes_accessed),
        compiler_params=pltpu.CompilerParams(vmem_limit_bytes=32 * 1024 * 1024),
    )(emb, wih_t, whh_t, bias, wout_t, bout)

    # Slice the padding off, then restore PyTorch batch_first layout.
    probs = jnp.transpose(probs_tbv[:, :B, :V], (1, 0, 2))      # (B, T, V)
    h_n = h_n[:B, :H][None]                                     # (1, B, H)
    c_n = c_n[:B, :H][None]                                     # (1, B, H)
    return probs, (h_n, c_n)


def gerador_reference(params, tokens):
    """Pure-JAX f32 reference matching PyTorch nn.LSTM semantics (gates i,f,g,o)."""
    emb_table = params["embedding"]
    w_ih, w_hh = params["w_ih"], params["w_hh"]
    b_ih, b_hh = params["b_ih"], params["b_hh"]
    w_out, b_out = params["w_out"], params["b_out"]
    H = w_hh.shape[1]

    emb = emb_table[tokens]                          # (B, T, E)
    B = emb.shape[0]
    x_t_major = jnp.transpose(emb, (1, 0, 2))        # (T, B, E)

    def step(carry, x_t):
        h, c = carry
        gates = x_t @ w_ih.T + b_ih + h @ w_hh.T + b_hh
        i_g = jax.nn.sigmoid(gates[:, 0:H])
        f_g = jax.nn.sigmoid(gates[:, H:2 * H])
        g_g = jnp.tanh(gates[:, 2 * H:3 * H])
        o_g = jax.nn.sigmoid(gates[:, 3 * H:4 * H])
        c_new = f_g * c + i_g * g_g
        h_new = o_g * jnp.tanh(c_new)
        return (h_new, c_new), h_new

    h0 = jnp.zeros((B, H), jnp.float32)
    c0 = jnp.zeros((B, H), jnp.float32)
    (h_f, c_f), hs = lax.scan(step, (h0, c0), x_t_major)   # hs: (T, B, H)
    out = jnp.transpose(hs, (1, 0, 2))                      # (B, T, H)
    logits = out @ w_out.T + b_out                          # (B, T, V)
    probs = jax.nn.softmax(logits, axis=1)                  # dim=1 == time axis
    return probs, (h_f[None], c_f[None])


def init_params(key, input_dim, embedding_dim, hidden_dim, output_size):
    ks = jax.random.split(key, 7)
    bound = 1.0 / jnp.sqrt(hidden_dim)
    u = lambda k, shape: jax.random.uniform(k, shape, jnp.float32, -bound, bound)
    return {
        "embedding": jax.random.normal(ks[0], (input_dim, embedding_dim), jnp.float32),
        "w_ih": u(ks[1], (4 * hidden_dim, embedding_dim)),
        "w_hh": u(ks[2], (4 * hidden_dim, hidden_dim)),
        "b_ih": u(ks[3], (4 * hidden_dim,)),
        "b_hh": u(ks[4], (4 * hidden_dim,)),
        "w_out": u(ks[5], (output_size, hidden_dim)),
        "b_out": u(ks[6], (output_size,)),
    }


if __name__ == "__main__":
    INPUT_DIM = 50      # vocab size
    EMBED_DIM = 32
    HIDDEN_DIM = 32
    OUTPUT_SIZE = 16
    B, T = 2, 8

    key = jax.random.PRNGKey(0)
    pkey, tkey = jax.random.split(key)
    params = init_params(pkey, INPUT_DIM, EMBED_DIM, HIDDEN_DIM, OUTPUT_SIZE)
    tokens = jax.random.randint(tkey, (B, T), 0, INPUT_DIM, dtype=jnp.int32)

    probs, (h_n, c_n) = jax.block_until_ready(
        jax.jit(gerador_forward)(params, tokens))

    # Sanity checks against a pure-f32 JAX reference of the same math.
    probs_ref, (h_ref, c_ref) = jax.block_until_ready(
        jax.jit(gerador_reference)(params, tokens))
    assert probs.shape == (B, T, OUTPUT_SIZE)
    assert h_n.shape == (1, B, HIDDEN_DIM) and c_n.shape == (1, B, HIDDEN_DIM)
    # Softmax(dim=1): probabilities sum to 1 over the time axis.
    assert jnp.allclose(jnp.sum(probs, axis=1), 1.0, atol=1e-5)
    # bf16 MXU operands (f32 accumulation) vs. the f32 reference: ~1e-2 tolerance.
    assert jnp.allclose(probs, probs_ref, atol=2e-2, rtol=2e-2)
    assert jnp.allclose(h_n, h_ref, atol=2e-2, rtol=2e-2)
    assert jnp.allclose(c_n, c_ref, atol=2e-2, rtol=2e-2)

    print("KERNEL_OK")
</pallas_src>

<mosaic_0001>
module attributes {stable_mosaic.version = 11 : i64} {
  func.func @gerador_kernel(%arg0: memref<64x32xbf16, #tpu.memory_space<vmem>>, %arg1: memref<32x512xbf16, #tpu.memory_space<vmem>>, %arg2: memref<128x512xbf16, #tpu.memory_space<vmem>>, %arg3: memref<1x512xf32, #tpu.memory_space<vmem>>, %arg4: memref<128x128xbf16, #tpu.memory_space<vmem>>, %arg5: memref<1x128xf32, #tpu.memory_space<vmem>>, %arg6: memref<8x8x128xf32, #tpu.memory_space<vmem>>, %arg7: memref<8x128xf32, #tpu.memory_space<vmem>>, %arg8: memref<8x128xf32, #tpu.memory_space<vmem>>, %arg9: memref<64x512xf32, #tpu.memory_space<vmem>>, %arg10: memref<64x128xf32, #tpu.memory_space<vmem>>) attributes {dimension_semantics = [], scalar_prefetch = 0 : i64, scratch_operands = 2 : i64, tpu.core_type = #tpu.core_type<tc>} {
    %c0 = arith.constant 0 : index
    %c0_0 = arith.constant 0 : index
    %0 = vector.load %arg0[%c0, %c0_0] : memref<64x32xbf16, #tpu.memory_space<vmem>>, vector<64x32xbf16>
    %c0_1 = arith.constant 0 : index
    %c0_2 = arith.constant 0 : index
    %1 = vector.load %arg1[%c0_1, %c0_2] : memref<32x512xbf16, #tpu.memory_space<vmem>>, vector<32x512xbf16>
    %cst = arith.constant dense<0.000000e+00> : vector<64x512xf32>
    %2 = tpu.matmul %0, %1, %cst {dimension_numbers = #tpu.dot_dimension_numbers<[1], [0], [0], [1], [0, 0, 1, 1], [], []>} : vector<64x32xbf16>, vector<32x512xbf16>, vector<64x512xf32> -> vector<64x512xf32>
    %c0_3 = arith.constant 0 : index
    %c0_4 = arith.constant 0 : index
    %3 = vector.load %arg3[%c0_3, %c0_4] : memref<1x512xf32, #tpu.memory_space<vmem>>, vector<1x512xf32>
    %4 = vector.broadcast %3 : vector<1x512xf32> to vector<64x512xf32>
    %5 = arith.addf %2, %4 : vector<64x512xf32>
    %c0_5 = arith.constant 0 : index
    %c0_6 = arith.constant 0 : index
    %6 = vector.load %arg9[%c0_5, %c0_6] : memref<64x512xf32, #tpu.memory_space<vmem>>, vector<64x512xf32>
    tpu.vector_store %arg9[%c0_5, %c0_6], %5 {strides = array<i32>} : memref<64x512xf32, #tpu.memory_space<vmem>>, vector<64x512xf32>,
    %c0_7 = arith.constant 0 : index
    %c0_8 = arith.constant 0 : index
    %7 = vector.load %arg2[%c0_7, %c0_8] : memref<128x512xbf16, #tpu.memory_space<vmem>>, vector<128x512xbf16>
    %cst_9 = arith.constant 0.000000e+00 : f32
    %8 = vector.broadcast %cst_9 : f32 to vector<8x128xf32>
    %cst_10 = arith.constant 0.000000e+00 : f32
    %9 = vector.broadcast %cst_10 : f32 to vector<8x128xf32>
    %c0_i32 = arith.constant 0 : i32
    %c8_i32 = arith.constant 8 : i32
    %10 = arith.muli %c0_i32, %c8_i32 : i32
    %11 = tpu.assume_multiple %10, 8 : i32
    %12 = arith.index_cast %11 : i32 to index
    %c0_11 = arith.constant 0 : index
    %13 = vector.load %arg9[%12, %c0_11] : memref<64x512xf32, #tpu.memory_space<vmem>>, vector<8x512xf32>
    %14 = arith.truncf %8 : vector<8x128xf32> to vector<8x128xbf16>
    %cst_12 = arith.constant dense<0.000000e+00> : vector<8x512xf32>
    %15 = tpu.matmul %14, %7, %cst_12 {dimension_numbers = #tpu.dot_dimension_numbers<[1], [0], [0], [1], [0, 0, 1, 1], [], []>} : vector<8x128xbf16>, vector<128x512xbf16>, vector<8x512xf32> -> vector<8x512xf32>
    %16 = arith.addf %13, %15 : vector<8x512xf32>
    %17 = vector.extract_strided_slice %16 {offsets = [0, 0], sizes = [8, 128], strides = [1, 1]} : vector<8x512xf32> to vector<8x128xf32>
    %18 = arith.negf %17 : vector<8x128xf32>
    %19 = math.exp %18 : vector<8x128xf32>
    %cst_13 = arith.constant 1.000000e+00 : f32
    %20 = vector.broadcast %cst_13 : f32 to vector<8x128xf32>
    %21 = arith.addf %20, %19 : vector<8x128xf32>
    %22 = arith.divf %20, %21 : vector<8x128xf32>
    %23 = vector.extract_strided_slice %16 {offsets = [0, 128], sizes = [8, 128], strides = [1, 1]} : vector<8x512xf32> to vector<8x128xf32>
    %24 = arith.negf %23 : vector<8x128xf32>
    %25 = math.exp %24 : vector<8x128xf32>
    %cst_14 = arith.constant 1.000000e+00 : f32
    %26 = vector.broadcast %cst_14 : f32 to vector<8x128xf32>
    %27 = arith.addf %26, %25 : vector<8x128xf32>
    %28 = arith.divf %26, %27 : vector<8x128xf32>
    %29 = vector.extract_strided_slice %16 {offsets = [0, 256], sizes = [8, 128], strides = [1, 1]} : vector<8x512xf32> to vector<8x128xf32>
    %30 = math.tanh %29 : vector<8x128xf32>
    %31 = vector.extract_strided_slice %16 {offsets = [0, 384], sizes = [8, 128], strides = [1, 1]} : vector<8x512xf32> to vector<8x128xf32>
    %32 = arith.negf %31 : vector<8x128xf32>
    %33 = math.exp %32 : vector<8x128xf32>
    %cst_15 = arith.constant 1.000000e+00 : f32
    %34 = vector.broadcast %cst_15 : f32 to vector<8x128xf32>
    %35 = arith.addf %34, %33 : vector<8x128xf32>
    %36 = arith.divf %34, %35 : vector<8x128xf32>
    %37 = arith.mulf %28, %9 : vector<8x128xf32>
    %38 = arith.mulf %22, %30 : vector<8x128xf32>
    %39 = arith.addf %37, %38 : vector<8x128xf32>
    %40 = math.tanh %39 : vector<8x128xf32>
    %41 = arith.mulf %36, %40 : vector<8x128xf32>
    %42 = arith.index_cast %11 : i32 to index
    %c0_16 = arith.constant 0 : index
    %43 = vector.load %arg10[%42, %c0_16] : memref<64x128xf32, #tpu.memory_space<vmem>>, vector<8x128xf32>
    tpu.vector_store %arg10[%42, %c0_16], %41 {strides = array<i32>} : memref<64x128xf32, #tpu.memory_space<vmem>>, vector<8x128xf32>,
    %c1_i32 = arith.constant 1 : i32
    %c8_i32_17 = arith.constant 8 : i32
    %44 = arith.muli %c1_i32, %c8_i32_17 : i32
    %45 = tpu.assume_multiple %44, 8 : i32
    %46 = arith.index_cast %45 : i32 to index
    %c0_18 = arith.constant 0 : index
    %47 = vector.load %arg9[%46, %c0_18] : memref<64x512xf32, #tpu.memory_space<vmem>>, vector<8x512xf32>
    %48 = arith.truncf %41 : vector<8x128xf32> to vector<8x128xbf16>
    %cst_19 = arith.constant dense<0.000000e+00> : vector<8x512xf32>
    %49 = tpu.matmul %48, %7, %cst_19 {dimension_numbers = #tpu.dot_dimension_numbers<[1], [0], [0], [1], [0, 0, 1, 1], [], []>} : vector<8x128xbf16>, vector<128x512xbf16>, vector<8x512xf32> -> vector<8x512xf32>
    %50 = arith.addf %47, %49 : vector<8x512xf32>
    %51 = vector.extract_strided_slice %50 {offsets = [0, 0], sizes = [8, 128], strides = [1, 1]} : vector<8x512xf32> to vector<8x128xf32>
    %52 = arith.negf %51 : vector<8x128xf32>
    %53 = math.exp %52 : vector<8x128xf32>
    %cst_20 = arith.constant 1.000000e+00 : f32
    %54 = vector.broadcast %cst_20 : f32 to vector<8x128xf32>
    %55 = arith.addf %54, %53 : vector<8x128xf32>
    %56 = arith.divf %54, %55 : vector<8x128xf32>
    %57 = vector.extract_strided_slice %50 {offsets = [0, 128], sizes = [8, 128], strides = [1, 1]} : vector<8x512xf32> to vector<8x128xf32>
    %58 = arith.negf %57 : vector<8x128xf32>
    %59 = math.exp %58 : vector<8x128xf32>
    %cst_21 = arith.constant 1.000000e+00 : f32
    %60 = vector.broadcast %cst_21 : f32 to vector<8x128xf32>
    %61 = arith.addf %60, %59 : vector<8x128xf32>
    %62 = arith.divf %60, %61 : vector<8x128xf32>
    %63 = vector.extract_strided_slice %50 {offsets = [0, 256], sizes = [8, 128], strides = [1, 1]} : vector<8x512xf32> to vector<8x128xf32>
    %64 = math.tanh %63 : vector<8x128xf32>
    %65 = vector.extract_strided_slice %50 {offsets = [0, 384], sizes = [8, 128], strides = [1, 1]} : vector<8x512xf32> to vector<8x128xf32>
    %66 = arith.negf %65 : vector<8x128xf32>
    %67 = math.exp %66 : vector<8x128xf32>
    %cst_22 = arith.constant 1.000000e+00 : f32
    %68 = vector.broadcast %cst_22 : f32 to vector<8x128xf32>
    %69 = arith.addf %68, %67 : vector<8x128xf32>
    %70 = arith.divf %68, %69 : vector<8x128xf32>
    %71 = arith.mulf %62, %39 : vector<8x128xf32>
    %72 = arith.mulf %56, %64 : vector<8x128xf32>
    %73 = arith.addf %71, %72 : vector<8x128xf32>
    %74 = math.tanh %73 : vector<8x128xf32>
    %75 = arith.mulf %70, %74 : vector<8x128xf32>
    %76 = arith.index_cast %45 : i32 to index
    %c0_23 = arith.constant 0 : index
    %77 = vector.load %arg10[%76, %c0_23] : memref<64x128xf32, #tpu.memory_space<vmem>>, vector<8x128xf32>
    tpu.vector_store %arg10[%76, %c0_23], %75 {strides = array<i32>} : memref<64x128xf32, #tpu.memory_space<vmem>>, vector<8x128xf32>,
    %c2_i32 = arith.constant 2 : i32
    %c8_i32_24 = arith.constant 8 : i32
    %78 = arith.muli %c2_i32, %c8_i32_24 : i32
    %79 = tpu.assume_multiple %78, 8 : i32
    %80 = arith.index_cast %79 : i32 to index
    %c0_25 = arith.constant 0 : index
    %81 = vector.load %arg9[%80, %c0_25] : memref<64x512xf32, #tpu.memory_space<vmem>>, vector<8x512xf32>
    %82 = arith.truncf %75 : vector<8x128xf32> to vector<8x128xbf16>
    %cst_26 = arith.constant dense<0.000000e+00> : vector<8x512xf32>
    %83 = tpu.matmul %82, %7, %cst_26 {dimension_numbers = #tpu.dot_dimension_numbers<[1], [0], [0], [1], [0, 0, 1, 1], [], []>} : vector<8x128xbf16>, vector<128x512xbf16>, vector<8x512xf32> -> vector<8x512xf32>
    %84 = arith.addf %81, %83 : vector<8x512xf32>
    %85 = vector.extract_strided_slice %84 {offsets = [0, 0], sizes = [8, 128], strides = [1, 1]} : vector<8x512xf32> to vector<8x128xf32>
    %86 = arith.negf %85 : vector<8x128xf32>
    %87 = math.exp %86 : vector<8x128xf32>
    %cst_27 = arith.constant 1.000000e+00 : f32
    %88 = vector.broadcast %cst_27 : f32 to vector<8x128xf32>
    %89 = arith.addf %88, %87 : vector<8x128xf32>
    %90 = arith.divf %88, %89 : vector<8x128xf32>
    %91 = vector.extract_strided_slice %84 {offsets = [0, 128], sizes = [8, 128], strides = [1, 1]} : vector<8x512xf32> to vector<8x128xf32>
    %92 = arith.negf %91 : vector<8x128xf32>
    %93 = math.exp %92 : vector<8x128xf32>
    %cst_28 = arith.constant 1.000000e+00 : f32
    %94 = vector.broadcast %cst_28 : f32 to vector<8x128xf32>
    %95 = arith.addf %94, %93 : vector<8x128xf32>
    %96 = arith.divf %94, %95 : vector<8x128xf32>
    %97 = vector.extract_strided_slice %84 {offsets = [0, 256], sizes = [8, 128], strides = [1, 1]} : vector<8x512xf32> to vector<8x128xf32>
    %98 = math.tanh %97 : vector<8x128xf32>
    %99 = vector.extract_strided_slice %84 {offsets = [0, 384], sizes = [8, 128], strides = [1, 1]} : vector<8x512xf32> to vector<8x128xf32>
    %100 = arith.negf %99 : vector<8x128xf32>
    %101 = math.exp %100 : vector<8x128xf32>
    %cst_29 = arith.constant 1.000000e+00 : f32
    %102 = vector.broadcast %cst_29 : f32 to vector<8x128xf32>
    %103 = arith.addf %102, %101 : vector<8x128xf32>
    %104 = arith.divf %102, %103 : vector<8x128xf32>
    %105 = arith.mulf %96, %73 : vector<8x128xf32>
    %106 = arith.mulf %90, %98 : vector<8x128xf32>
    %107 = arith.addf %105, %106 : vector<8x128xf32>
    %108 = math.tanh %107 : vector<8x128xf32>
    %109 = arith.mulf %104, %108 : vector<8x128xf32>
    %110 = arith.index_cast %79 : i32 to index
    %c0_30 = arith.constant 0 : index
    %111 = vector.load %arg10[%110, %c0_30] : memref<64x128xf32, #tpu.memory_space<vmem>>, vector<8x128xf32>
    tpu.vector_store %arg10[%110, %c0_30], %109 {strides = array<i32>} : memref<64x128xf32, #tpu.memory_space<vmem>>, vector<8x128xf32>,
    %c3_i32 = arith.constant 3 : i32
    %c8_i32_31 = arith.constant 8 : i32
    %112 = arith.muli %c3_i32, %c8_i32_31 : i32
    %113 = tpu.assume_multiple %112, 8 : i32
    %114 = arith.index_cast %113 : i32 to index
    %c0_32 = arith.constant 0 : index
    %115 = vector.load %arg9[%114, %c0_32] : memref<64x512xf32, #tpu.memory_space<vmem>>, vector<8x512xf32>
    %116 = arith.truncf %109 : vector<8x128xf32> to vector<8x128xbf16>
    %cst_33 = arith.constant dense<0.000000e+00> : vector<8x512xf32>
    %117 = tpu.matmul %116, %7, %cst_33 {dimension_numbers = #tpu.dot_dimension_numbers<[1], [0], [0], [1], [0, 0, 1, 1], [], []>} : vector<8x128xbf16>, vector<128x512xbf16>, vector<8x512xf32> -> vector<8x512xf32>
    %118 = arith.addf %115, %117 : vector<8x512xf32>
    %119 = vector.extract_strided_slice %118 {offsets = [0, 0], sizes = [8, 128], strides = [1, 1]} : vector<8x512xf32> to vector<8x128xf32>
    %120 = arith.negf %119 : vector<8x128xf32>
    %121 = math.exp %120 : vector<8x128xf32>
    %cst_34 = arith.constant 1.000000e+00 : f32
    %122 = vector.broadcast %cst_34 : f32 to vector<8x128xf32>
    %123 = arith.addf %122, %121 : vector<8x128xf32>
    %124 = arith.divf %122, %123 : vector<8x128xf32>
    %125 = vector.extract_strided_slice %118 {offsets = [0, 128], sizes = [8, 128], strides = [1, 1]} : vector<8x512xf32> to vector<8x128xf32>
    %126 = arith.negf %125 : vector<8x128xf32>
    %127 = math.exp %126 : vector<8x128xf32>
    %cst_35 = arith.constant 1.000000e+00 : f32
    %128 = vector.broadcast %cst_35 : f32 to vector<8x128xf32>
    %129 = arith.addf %128, %127 : vector<8x128xf32>
    %130 = arith.divf %128, %129 : vector<8x128xf32>
    %131 = vector.extract_strided_slice %118 {offsets = [0, 256], sizes = [8, 128], strides = [1, 1]} : vector<8x512xf32> to vector<8x128xf32>
    %132 = math.tanh %131 : vector<8x128xf32>
    %133 = vector.extract_strided_slice %118 {offsets = [0, 384], sizes = [8, 128], strides = [1, 1]} : vector<8x512xf32> to vector<8x128xf32>
    %134 = arith.negf %133 : vector<8x128xf32>
    %135 = math.exp %134 : vector<8x128xf32>
    %cst_36 = arith.constant 1.000000e+00 : f32
    %136 = vector.broadcast %cst_36 : f32 to vector<8x128xf32>
    %137 = arith.addf %136, %135 : vector<8x128xf32>
    %138 = arith.divf %136, %137 : vector<8x128xf32>
    %139 = arith.mulf %130, %107 : vector<8x128xf32>
    %140 = arith.mulf %124, %132 : vector<8x128xf32>
    %141 = arith.addf %139, %140 : vector<8x128xf32>
    %142 = math.tanh %141 : vector<8x128xf32>
    %143 = arith.mulf %138, %142 : vector<8x128xf32>
    %144 = arith.index_cast %113 : i32 to index
    %c0_37 = arith.constant 0 : index
    %145 = vector.load %arg10[%144, %c0_37] : memref<64x128xf32, #tpu.memory_space<vmem>>, vector<8x128xf32>
    tpu.vector_store %arg10[%144, %c0_37], %143 {strides = array<i32>} : memref<64x128xf32, #tpu.memory_space<vmem>>, vector<8x128xf32>,
    %c4_i32 = arith.constant 4 : i32
    %c8_i32_38 = arith.constant 8 : i32
    %146 = arith.muli %c4_i32, %c8_i32_38 : i32
    %147 = tpu.assume_multiple %146, 8 : i32
    %148 = arith.index_cast %147 : i32 to index
    %c0_39 = arith.constant 0 : index
    %149 = vector.load %arg9[%148, %c0_39] : memref<64x512xf32, #tpu.memory_space<vmem>>, vector<8x512xf32>
    %150 = arith.truncf %143 : vector<8x128xf32> to vector<8x128xbf16>
    %cst_40 = arith.constant dense<0.000000e+00> : vector<8x512xf32>
    %151 = tpu.matmul %150, %7, %cst_40 {dimension_numbers = #tpu.dot_dimension_numbers<[1], [0], [0], [1], [0, 0, 1, 1], [], []>} : vector<8x128xbf16>, vector<128x512xbf16>, vector<8x512xf32> -> vector<8x512xf32>
    %152 = arith.addf %149, %151 : vector<8x512xf32>
    %153 = vector.extract_strided_slice %152 {offsets = [0, 0], sizes = [8, 128], strides = [1, 1]} : vector<8x512xf32> to vector<8x128xf32>
    %154 = arith.negf %153 : vector<8x128xf32>
    %155 = math.exp %154 : vector<8x128xf32>
    %cst_41 = arith.constant 1.000000e+00 : f32
    %156 = vector.broadcast %cst_41 : f32 to vector<8x128xf32>
    %157 = arith.addf %156, %155 : vector<8x128xf32>
    %158 = arith.divf %156, %157 : vector<8x128xf32>
    %159 = vector.extract_strided_slice %152 {offsets = [0, 128], sizes = [8, 128], strides = [1, 1]} : vector<8x512xf32> to vector<8x128xf32>
    %160 = arith.negf %159 : vector<8x128xf32>
    %161 = math.exp %160 : vector<8x128xf32>
    %cst_42 = arith.constant 1.000000e+00 : f32
    %162 = vector.broadcast %cst_42 : f32 to vector<8x128xf32>
    %163 = arith.addf %162, %161 : vector<8x128xf32>
    %164 = arith.divf %162, %163 : vector<8x128xf32>
    %165 = vector.extract_strided_slice %152 {offsets = [0, 256], sizes = [8, 128], strides = [1, 1]} : vector<8x512xf32> to vector<8x128xf32>
    %166 = math.tanh %165 : vector<8x128xf32>
    %167 = vector.extract_strided_slice %152 {offsets = [0, 384], sizes = [8, 128], strides = [1, 1]} : vector<8x512xf32> to vector<8x128xf32>
    %168 = arith.negf %167 : vector<8x128xf32>
    %169 = math.exp %168 : vector<8x128xf32>
    %cst_43 = arith.constant 1.000000e+00 : f32
    %170 = vector.broadcast %cst_43 : f32 to vector<8x128xf32>
    %171 = arith.addf %170, %169 : vector<8x128xf32>
    %172 = arith.divf %170, %171 : vector<8x128xf32>
    %173 = arith.mulf %164, %141 : vector<8x128xf32>
    %174 = arith.mulf %158, %166 : vector<8x128xf32>
    %175 = arith.addf %173, %174 : vector<8x128xf32>
    %176 = math.tanh %175 : vector<8x128xf32>
    %177 = arith.mulf %172, %176 : vector<8x128xf32>
    %178 = arith.index_cast %147 : i32 to index
    %c0_44 = arith.constant 0 : index
    %179 = vector.load %arg10[%178, %c0_44] : memref<64x128xf32, #tpu.memory_space<vmem>>, vector<8x128xf32>
    tpu.vector_store %arg10[%178, %c0_44], %177 {strides = array<i32>} : memref<64x128xf32, #tpu.memory_space<vmem>>, vector<8x128xf32>,
    %c5_i32 = arith.constant 5 : i32
    %c8_i32_45 = arith.constant 8 : i32
    %180 = arith.muli %c5_i32, %c8_i32_45 : i32
    %181 = tpu.assume_multiple %180, 8 : i32
    %182 = arith.index_cast %181 : i32 to index
    %c0_46 = arith.constant 0 : index
    %183 = vector.load %arg9[%182, %c0_46] : memref<64x512xf32, #tpu.memory_space<vmem>>, vector<8x512xf32>
    %184 = arith.truncf %177 : vector<8x128xf32> to vector<8x128xbf16>
    %cst_47 = arith.constant dense<0.000000e+00> : vector<8x512xf32>
    %185 = tpu.matmul %184, %7, %cst_47 {dimension_numbers = #tpu.dot_dimension_numbers<[1], [0], [0], [1], [0, 0, 1, 1], [], []>} : vector<8x128xbf16>, vector<128x512xbf16>, vector<8x512xf32> -> vector<8x512xf32>
    %186 = arith.addf %183, %185 : vector<8x512xf32>
    %187 = vector.extract_strided_slice %186 {offsets = [0, 0], sizes = [8, 128], strides = [1, 1]} : vector<8x512xf32> to vector<8x128xf32>
    %188 = arith.negf %187 : vector<8x128xf32>
    %189 = math.exp %188 : vector<8x128xf32>
    %cst_48 = arith.constant 1.000000e+00 : f32
    %190 = vector.broadcast %cst_48 : f32 to vector<8x128xf32>
    %191 = arith.addf %190, %189 : vector<8x128xf32>
    %192 = arith.divf %190, %191 : vector<8x128xf32>
    %193 = vector.extract_strided_slice %186 {offsets = [0, 128], sizes = [8, 128], strides = [1, 1]} : vector<8x512xf32> to vector<8x128xf32>
    %194 = arith.negf %193 : vector<8x128xf32>
    %195 = math.exp %194 : vector<8x128xf32>
    %cst_49 = arith.constant 1.000000e+00 : f32
    %196 = vector.broadcast %cst_49 : f32 to vector<8x128xf32>
    %197 = arith.addf %196, %195 : vector<8x128xf32>
    %198 = arith.divf %196, %197 : vector<8x128xf32>
    %199 = vector.extract_strided_slice %186 {offsets = [0, 256], sizes = [8, 128], strides = [1, 1]} : vector<8x512xf32> to vector<8x128xf32>
    %200 = math.tanh %199 : vector<8x128xf32>
    %201 = vector.extract_strided_slice %186 {offsets = [0, 384], sizes = [8, 128], strides = [1, 1]} : vector<8x512xf32> to vector<8x128xf32>
    %202 = arith.negf %201 : vector<8x128xf32>
    %203 = math.exp %202 : vector<8x128xf32>
    %cst_50 = arith.constant 1.000000e+00 : f32
    %204 = vector.broadcast %cst_50 : f32 to vector<8x128xf32>
    %205 = arith.addf %204, %203 : vector<8x128xf32>
    %206 = arith.divf %204, %205 : vector<8x128xf32>
    %207 = arith.mulf %198, %175 : vector<8x128xf32>
    %208 = arith.mulf %192, %200 : vector<8x128xf32>
    %209 = arith.addf %207, %208 : vector<8x128xf32>
    %210 = math.tanh %209 : vector<8x128xf32>
    %211 = arith.mulf %206, %210 : vector<8x128xf32>
    %212 = arith.index_cast %181 : i32 to index
    %c0_51 = arith.constant 0 : index
    %213 = vector.load %arg10[%212, %c0_51] : memref<64x128xf32, #tpu.memory_space<vmem>>, vector<8x128xf32>
    tpu.vector_store %arg10[%212, %c0_51], %211 {strides = array<i32>} : memref<64x128xf32, #tpu.memory_space<vmem>>, vector<8x128xf32>,
    %c6_i32 = arith.constant 6 : i32
    %c8_i32_52 = arith.constant 8 : i32
    %214 = arith.muli %c6_i32, %c8_i32_52 : i32
    %215 = tpu.assume_multiple %214, 8 : i32
    %216 = arith.index_cast %215 : i32 to index
    %c0_53 = arith.constant 0 : index
    %217 = vector.load %arg9[%216, %c0_53] : memref<64x512xf32, #tpu.memory_space<vmem>>, vector<8x512xf32>
    %218 = arith.truncf %211 : vector<8x128xf32> to vector<8x128xbf16>
    %cst_54 = arith.constant dense<0.000000e+00> : vector<8x512xf32>
    %219 = tpu.matmul %218, %7, %cst_54 {dimension_numbers = #tpu.dot_dimension_numbers<[1], [0], [0], [1], [0, 0, 1, 1], [], []>} : vector<8x128xbf16>, vector<128x512xbf16>, vector<8x512xf32> -> vector<8x512xf32>
    %220 = arith.addf %217, %219 : vector<8x512xf32>
    %221 = vector.extract_strided_slice %220 {offsets = [0, 0], sizes = [8, 128], strides = [1, 1]} : vector<8x512xf32> to vector<8x128xf32>
    %222 = arith.negf %221 : vector<8x128xf32>
    %223 = math.exp %222 : vector<8x128xf32>
    %cst_55 = arith.constant 1.000000e+00 : f32
    %224 = vector.broadcast %cst_55 : f32 to vector<8x128xf32>
    %225 = arith.addf %224, %223 : vector<8x128xf32>
    %226 = arith.divf %224, %225 : vector<8x128xf32>
    %227 = vector.extract_strided_slice %220 {offsets = [0, 128], sizes = [8, 128], strides = [1, 1]} : vector<8x512xf32> to vector<8x128xf32>
    %228 = arith.negf %227 : vector<8x128xf32>
    %229 = math.exp %228 : vector<8x128xf32>
    %cst_56 = arith.constant 1.000000e+00 : f32
    %230 = vector.broadcast %cst_56 : f32 to vector<8x128xf32>
    %231 = arith.addf %230, %229 : vector<8x128xf32>
    %232 = arith.divf %230, %231 : vector<8x128xf32>
    %233 = vector.extract_strided_slice %220 {offsets = [0, 256], sizes = [8, 128], strides = [1, 1]} : vector<8x512xf32> to vector<8x128xf32>
    %234 = math.tanh %233 : vector<8x128xf32>
    %235 = vector.extract_strided_slice %220 {offsets = [0, 384], sizes = [8, 128], strides = [1, 1]} : vector<8x512xf32> to vector<8x128xf32>
    %236 = arith.negf %235 : vector<8x128xf32>
    %237 = math.exp %236 : vector<8x128xf32>
    %cst_57 = arith.constant 1.000000e+00 : f32
    %238 = vector.broadcast %cst_57 : f32 to vector<8x128xf32>
    %239 = arith.addf %238, %237 : vector<8x128xf32>
    %240 = arith.divf %238, %239 : vector<8x128xf32>
    %241 = arith.mulf %232, %209 : vector<8x128xf32>
    %242 = arith.mulf %226, %234 : vector<8x128xf32>
    %243 = arith.addf %241, %242 : vector<8x128xf32>
    %244 = math.tanh %243 : vector<8x128xf32>
    %245 = arith.mulf %240, %244 : vector<8x128xf32>
    %246 = arith.index_cast %215 : i32 to index
    %c0_58 = arith.constant 0 : index
    %247 = vector.load %arg10[%246, %c0_58] : memref<64x128xf32, #tpu.memory_space<vmem>>, vector<8x128xf32>
    tpu.vector_store %arg10[%246, %c0_58], %245 {strides = array<i32>} : memref<64x128xf32, #tpu.memory_space<vmem>>, vector<8x128xf32>,
    %c7_i32 = arith.constant 7 : i32
    %c8_i32_59 = arith.constant 8 : i32
    %248 = arith.muli %c7_i32, %c8_i32_59 : i32
    %249 = tpu.assume_multiple %248, 8 : i32
    %250 = arith.index_cast %249 : i32 to index
    %c0_60 = arith.constant 0 : index
    %251 = vector.load %arg9[%250, %c0_60] : memref<64x512xf32, #tpu.memory_space<vmem>>, vector<8x512xf32>
    %252 = arith.truncf %245 : vector<8x128xf32> to vector<8x128xbf16>
    %cst_61 = arith.constant dense<0.000000e+00> : vector<8x512xf32>
    %253 = tpu.matmul %252, %7, %cst_61 {dimension_numbers = #tpu.dot_dimension_numbers<[1], [0], [0], [1], [0, 0, 1, 1], [], []>} : vector<8x128xbf16>, vector<128x512xbf16>, vector<8x512xf32> -> vector<8x512xf32>
    %254 = arith.addf %251, %253 : vector<8x512xf32>
    %255 = vector.extract_strided_slice %254 {offsets = [0, 0], sizes = [8, 128], strides = [1, 1]} : vector<8x512xf32> to vector<8x128xf32>
    %256 = arith.negf %255 : vector<8x128xf32>
    %257 = math.exp %256 : vector<8x128xf32>
    %cst_62 = arith.constant 1.000000e+00 : f32
    %258 = vector.broadcast %cst_62 : f32 to vector<8x128xf32>
    %259 = arith.addf %258, %257 : vector<8x128xf32>
    %260 = arith.divf %258, %259 : vector<8x128xf32>
    %261 = vector.extract_strided_slice %254 {offsets = [0, 128], sizes = [8, 128], strides = [1, 1]} : vector<8x512xf32> to vector<8x128xf32>
    %262 = arith.negf %261 : vector<8x128xf32>
    %263 = math.exp %262 : vector<8x128xf32>
    %cst_63 = arith.constant 1.000000e+00 : f32
    %264 = vector.broadcast %cst_63 : f32 to vector<8x128xf32>
    %265 = arith.addf %264, %263 : vector<8x128xf32>
    %266 = arith.divf %264, %265 : vector<8x128xf32>
    %267 = vector.extract_strided_slice %254 {offsets = [0, 256], sizes = [8, 128], strides = [1, 1]} : vector<8x512xf32> to vector<8x128xf32>
    %268 = math.tanh %267 : vector<8x128xf32>
    %269 = vector.extract_strided_slice %254 {offsets = [0, 384], sizes = [8, 128], strides = [1, 1]} : vector<8x512xf32> to vector<8x128xf32>
    %270 = arith.negf %269 : vector<8x128xf32>
    %271 = math.exp %270 : vector<8x128xf32>
    %cst_64 = arith.constant 1.000000e+00 : f32
    %272 = vector.broadcast %cst_64 : f32 to vector<8x128xf32>
    %273 = arith.addf %272, %271 : vector<8x128xf32>
    %274 = arith.divf %272, %273 : vector<8x128xf32>
    %275 = arith.mulf %266, %243 : vector<8x128xf32>
    %276 = arith.mulf %260, %268 : vector<8x128xf32>
    %277 = arith.addf %275, %276 : vector<8x128xf32>
    %278 = math.tanh %277 : vector<8x128xf32>
    %279 = arith.mulf %274, %278 : vector<8x128xf32>
    %280 = arith.index_cast %249 : i32 to index
    %c0_65 = arith.constant 0 : index
    %281 = vector.load %arg10[%280, %c0_65] : memref<64x128xf32, #tpu.memory_space<vmem>>, vector<8x128xf32>
    tpu.vector_store %arg10[%280, %c0_65], %279 {strides = array<i32>} : memref<64x128xf32, #tpu.memory_space<vmem>>, vector<8x128xf32>,
    %c8_i32_66 = arith.constant 8 : i32
    %c0_67 = arith.constant 0 : index
    %c0_68 = arith.constant 0 : index
    %282 = vector.load %arg7[%c0_67, %c0_68] : memref<8x128xf32, #tpu.memory_space<vmem>>, vector<8x128xf32>
    tpu.vector_store %arg7[%c0_67, %c0_68], %279 {strides = array<i32>} : memref<8x128xf32, #tpu.memory_space<vmem>>, vector<8x128xf32>,
    %c0_69 = arith.constant 0 : index
    %c0_70 = arith.constant 0 : index
    %283 = vector.load %arg8[%c0_69, %c0_70] : memref<8x128xf32, #tpu.memory_space<vmem>>, vector<8x128xf32>
    tpu.vector_store %arg8[%c0_69, %c0_70], %277 {strides = array<i32>} : memref<8x128xf32, #tpu.memory_space<vmem>>, vector<8x128xf32>,
    %c0_71 = arith.constant 0 : index
    %c0_72 = arith.constant 0 : index
    %284 = vector.load %arg10[%c0_71, %c0_72] : memref<64x128xf32, #tpu.memory_space<vmem>>, vector<64x128xf32>
    %285 = arith.truncf %284 : vector<64x128xf32> to vector<64x128xbf16>
    %c0_73 = arith.constant 0 : index
    %c0_74 = arith.constant 0 : index
    %286 = vector.load %arg4[%c0_73, %c0_74] : memref<128x128xbf16, #tpu.memory_space<vmem>>, vector<128x128xbf16>
    %cst_75 = arith.constant dense<0.000000e+00> : vector<64x128xf32>
    %287 = tpu.matmul %285, %286, %cst_75 {dimension_numbers = #tpu.dot_dimension_numbers<[1], [0], [0], [1], [0, 0, 1, 1], [], []>} : vector<64x128xbf16>, vector<128x128xbf16>, vector<64x128xf32> -> vector<64x128xf32>
    %c0_76 = arith.constant 0 : index
    %c0_77 = arith.constant 0 : index
    %288 = vector.load %arg5[%c0_76, %c0_77] : memref<1x128xf32, #tpu.memory_space<vmem>>, vector<1x128xf32>
    %289 = vector.broadcast %288 : vector<1x128xf32> to vector<64x128xf32>
    %290 = arith.addf %287, %289 : vector<64x128xf32>
    %291 = vector.shape_cast %290 : vector<64x128xf32> to vector<8x8x128xf32>
    %cst_78 = arith.constant dense<0xFF800000> : vector<8x128xf32>
    %292 = vector.multi_reduction <maximumf>, %291, %cst_78 [0] : vector<8x8x128xf32> to vector<8x128xf32>
    %293 = vector.shape_cast %292 : vector<8x128xf32> to vector<1x8x128xf32>
    %294 = vector.broadcast %293 : vector<1x8x128xf32> to vector<8x8x128xf32>
    %295 = arith.subf %291, %294 : vector<8x8x128xf32>
    %296 = math.exp %295 : vector<8x8x128xf32>
    %cst_79 = arith.constant dense<0.000000e+00> : vector<8x128xf32>
    %297 = vector.multi_reduction <add>, %296, %cst_79 [0] : vector<8x8x128xf32> to vector<8x128xf32>
    %298 = vector.shape_cast %297 : vector<8x128xf32> to vector<1x8x128xf32>
    %299 = vector.broadcast %298 : vector<1x8x128xf32> to vector<8x8x128xf32>
    %300 = arith.divf %296, %299 : vector<8x8x128xf32>
    %c0_80 = arith.constant 0 : index
    %c0_81 = arith.constant 0 : index
    %c0_82 = arith.constant 0 : index
    %301 = vector.load %arg6[%c0_80, %c0_81, %c0_82] : memref<8x8x128xf32, #tpu.memory_space<vmem>>, vector<8x8x128xf32>
    tpu.vector_store %arg6[%c0_80, %c0_81, %c0_82], %300 {strides = array<i32>} : memref<8x8x128xf32, #tpu.memory_space<vmem>>, vector<8x8x128xf32>,
    return
  }
}

</mosaic_0001>

<bundles_post_ra>
// kernel: gerador_forward.1
= control target key start
LH: loop header
LB: loop body
LE: loop exit
PB: predicated region body
PF: predicated region fallthrough
CT: control target
= control target key end

     0   :  { %v2922_v1 = vmov 0   ;;  %vm125_vm0 = vcmask 261120   ;;  %v45_v45 = vlaneseq  ;;  %s2913_s1 = inlined_call_operand.vmem [shape: bf16[32,512], index: 1, kind: input, shape index: {}]   ;;  %s2914_s2 = inlined_call_operand.vmem [shape: bf16[128,512], index: 2, kind: input, shape index: {}]   ;;  %s2915_s0 = inlined_call_operand.vmem [shape: bf16[64,32], index: 0, kind: input, shape index: {}]   ;;  %s2916_s3 = inlined_call_operand.vmem [shape: f32[1,512], index: 3, kind: input, shape index: {}]   ;;  %s2917_s4 = inlined_call_operand.vmem [shape: bf16[128,128], index: 4, kind: input, shape index: {}]   ;;  %s2918_s8 = inlined_call_operand.vmem [shape: f32[8,128], index: 8, kind: output, shape index: {2}]   ;;  %s2919_s7 = inlined_call_operand.vmem [shape: f32[8,128], index: 7, kind: output, shape index: {1}]   ;;  %s2920_s5 = inlined_call_operand.vmem [shape: f32[1,128], index: 5, kind: input, shape index: {}]   ;;  %s2921_s6 = inlined_call_operand.vmem [shape: f32[8,8,128], index: 6, kind: output, shape index: {0}]  }
   0x1   :  { %v1812_v0 = vld [vmem:[%s2913_s1 + $0x4] ss:$16 sps:$4 sm:$0xff]   ;;  %170 = vmatprep.mubr.bf16.mxu1 %v2922_v1  ;;  %547 = vmatprep.mubr.bf16.mxu0 %v2922_v1  ;;  %v1816_v3 = vld [vmem:[%s2913_s1] ss:$16 sps:$4 sm:$0xff]   ;;  %v1825_v10 = vld [vmem:[%s2913_s1 + $0x8] ss:$16 sps:$4 sm:$0xff]  }
   0x2   :  { %v2116_v2 = vld [vmem:[%s2914_s2 + $0x4] ss:$16 sps:$4 sm:$0xff]   ;;  %138 = vmatprep.subr.bf16.mxu1 %v1812_v0  ;;  %v2124_v4 = vld [vmem:[%s2914_s2] ss:$16 sps:$4 sm:$0xff]   ;;  %v1827_v11 = vld [vmem:[%s2913_s1 + $0xc] ss:$16 sps:$4 sm:$0xff]  }
   0x3   :  { %515 = vmatprep.subr.bf16.mxu0 %v2116_v2  ;;  %v1818_v5 = vld [vmem:[%s2913_s1 + $0x24] ss:$16 sps:$4 sm:$0xff]   ;;  %139 = vmatpush1.bf16.msra.mxu1 %v1816_v3  ;;  %v1822_v7 = vld [vmem:[%s2913_s1 + $0x20] ss:$16 sps:$4 sm:$0xff]   ;;  %v1834_v17 = vld [vmem:[%s2915_s0 + $0x8] sm:$0xff]   ;;  %v46_v46 = vshrl.u32 %v45_v45, 7 }
   0x4   :  { %516 = vmatpush1.bf16.msra.mxu0 %v2124_v4  ;;  %v2134_v6 = vld [vmem:[%s2914_s2 + $0x24] ss:$16 sps:$4 sm:$0xff]   ;;  %140 = vmatprep.subr.bf16.mxu1 %v1818_v5  ;;  %v2142_v8 = vld [vmem:[%s2914_s2 + $0x20] ss:$16 sps:$4 sm:$0xff]   ;;  %v1844_v19 = vld [vmem:[%s2913_s1 + $0x2c] ss:$16 sps:$4 sm:$0xff]  }
   0x5   :  { %517 = vmatprep.subr.bf16.mxu0 %v2134_v6  ;;  %v1824_v9 = vld [vmem:[%s2915_s0] sm:$0xff]   ;;  %v1842_v21 = vld [vmem:[%s2913_s1 + $0x28] ss:$16 sps:$4 sm:$0xff]   ;;  %v2217_v23 = vld [vmem:[%s2914_s2 + $0xc] ss:$16 sps:$4 sm:$0xff]   ;;  %v47_v47 = vsub.s32 0, %v46_v46 }
   0x6   :  { %v2158_v12 = vld [vmem:[%s2914_s2 + $0x44] ss:$16 sps:$4 sm:$0xff]   ;;  %v2163_v13 = vld [vmem:[%s2914_s2 + $0x40] ss:$16 sps:$4 sm:$0xff]   ;;  %v1851_v29 = vld [vmem:[%s2915_s0 + $0x18] sm:$0xff]   ;;  %v51_v49 = vsub.s32 1, %v46_v46 }
   0x7   :  { %141 = vmatpush1.bf16.msra.mxu1 %v1822_v7  ;;  %v2168_v14 = vld [vmem:[%s2914_s2 + $0x64] ss:$16 sps:$4 sm:$0xff]   ;;  %v2176_v15 = vld [vmem:[%s2914_s2 + $0x60] ss:$16 sps:$4 sm:$0xff]   ;;  %v2264_v30 = vld [vmem:[%s2914_s2 + $0x8] ss:$16 sps:$4 sm:$0xff]  }
   0x8   :  { %518 = vmatpush1.bf16.msra.mxu0 %v2142_v8  ;;  %211 = vmatprep.subr.bf16.mxu1 %v1827_v11  ;;  %v2183_v16 = vld [vmem:[%s2914_s2 + $0x84] ss:$16 sps:$4 sm:$0xff]   ;;  %v2191_v18 = vld [vmem:[%s2914_s2 + $0x80] ss:$16 sps:$4 sm:$0xff]   ;;  %v2270_v31 = vld [vmem:[%s2914_s2 + $0x2c] ss:$16 sps:$4 sm:$0xff]  }
   0x9   :  { %519 = vmatprep.subr.bf16.mxu0 %v2158_v12  ;;  %v2201_v20 = vld [vmem:[%s2914_s2 + $0xa4] ss:$16 sps:$4 sm:$0xff]   ;;  %v2210_v22 = vld [vmem:[%s2914_s2 + $0xa0] ss:$16 sps:$4 sm:$0xff]   ;;  %v2278_v32 = vld [vmem:[%s2914_s2 + $0x28] ss:$16 sps:$4 sm:$0xff]  }
   0xa   :  { %1702 = vmatmul.mubr.msk.bf16.vlgmr.msra.gmra.mrb[0].mxu1 %vm125_vm0, %v1824_v9  ;;  %v2223_v24 = vld [vmem:[%s2914_s2 + $0xc4] ss:$16 sps:$4 sm:$0xff]   ;;  %v2233_v26 = vld [vmem:[%s2914_s2 + $0xc0] ss:$16 sps:$4 sm:$0xff]   ;;  %v2285_v33 = vld [vmem:[%s2914_s2 + $0x4c] ss:$16 sps:$4 sm:$0xff]  }
   0xb   :  { %212 = vmatpush1.bf16.msra.mxu1 %v1825_v10  ;;  %180 = vmatprep.mubr.bf16.mxu1 %v2922_v1  ;;  %v1841_v25 = vld [vmem:[%s2915_s0 + $0x10] sm:$0xff]   ;;  %v2293_v34 = vld [vmem:[%s2914_s2 + $0x48] ss:$16 sps:$4 sm:$0xff]   ;;  %v2299_v35 = vld [vmem:[%s2914_s2 + $0x6c] ss:$16 sps:$4 sm:$0xff]  }
   0xc   :  { %520 = vmatpush1.bf16.msra.mxu0 %v2163_v13  ;;  %213 = vmatprep.subr.bf16.mxu1 %v1844_v19  ;;  %v2239_v27 = vld [vmem:[%s2914_s2 + $0xe4] ss:$16 sps:$4 sm:$0xff]   ;;  %v2246_v28 = vld [vmem:[%s2914_s2 + $0xe0] ss:$16 sps:$4 sm:$0xff]   ;;  %v2308_v36 = vld [vmem:[%s2914_s2 + $0x68] ss:$16 sps:$4 sm:$0xff]  }
   0xd   :  { %521 = vmatprep.subr.bf16.mxu0 %v2168_v14  ;;  %v2315_v37 = vld [vmem:[%s2914_s2 + $0x8c] ss:$16 sps:$4 sm:$0xff]   ;;  %v2323_v38 = vld [vmem:[%s2914_s2 + $0x88] ss:$16 sps:$4 sm:$0xff]   ;;  %v43_v48 = vld [vmem:[%s2916_s3] sm:$0xf] }
   0xe   :  { %v2329_v39 = vld [vmem:[%s2914_s2 + $0xac] ss:$16 sps:$4 sm:$0xff]   ;;  %v2338_v40 = vld [vmem:[%s2914_s2 + $0xa8] ss:$16 sps:$4 sm:$0xff]   ;;  %v48_v51 = vrot.slane %v43_v48, %v47_v47  ;;  %v52_v53 = vrot.slane %v43_v48, %v51_v49 }
   0xf   :  { %214 = vmatpush1.bf16.msra.mxu1 %v1842_v21  ;;  %v2345_v41 = vld [vmem:[%s2914_s2 + $0xcc] ss:$16 sps:$4 sm:$0xff]   ;;  %v2353_v42 = vld [vmem:[%s2914_s2 + $0xc8] ss:$16 sps:$4 sm:$0xff]  }
  0x10   :  { %522 = vmatpush1.bf16.msra.mxu0 %v2176_v15  ;;  %556 = vmatprep.subr.bf16.mxu1 %v2217_v23  ;;  %v2359_v43 = vld [vmem:[%s2914_s2 + $0xec] ss:$16 sps:$4 sm:$0xff]   ;;  %v2368_v44 = vld [vmem:[%s2914_s2 + $0xe8] ss:$16 sps:$4 sm:$0xff]  }
  0x11   :  { %523 = vmatprep.subr.bf16.mxu0 %v2183_v16 }
  0x12   :  { %1703 = vmatmul.mubr.msk.bf16.gmra.mrb[4].mxu1 %vm125_vm0, %v1834_v17 }
  0x13   :  { %190 = vmatprep.mubr.bf16.mxu1 %v2922_v1 }
  0x14   :  { %524 = vmatpush1.bf16.msra.mxu0 %v2191_v18 }
  0x15   :  { %525 = vmatprep.subr.bf16.mxu0 %v2201_v20 }
  0x18   :  { %526 = vmatpush1.bf16.msra.mxu0 %v2210_v22 }
  0x19   :  { %527 = vmatprep.subr.bf16.mxu0 %v2223_v24 }
  0x1a   :  { %1704 = vmatmul.mubr.msk.bf16.gmra.mrb[8].mxu1 %vm125_vm0, %v1841_v25 }
  0x1b   :  { %200 = vmatprep.mubr.bf16.mxu1 %v2922_v1 }
  0x1c   :  { %528 = vmatpush1.bf16.msra.mxu0 %v2233_v26 }
  0x1d   :  { %529 = vmatprep.subr.bf16.mxu0 %v2239_v27 }
  0x20   :  { %530 = vmatpush1.bf16.msra.mxu0 %v2246_v28 }
  0x21   :  { %634 = vmatprep.subr.bf16.mxu0 %v2116_v2 }
  0x22   :  { %1705 = vmatmul.mubr.msk.bf16.gmra.mrb[12].mxu1 %vm125_vm0, %v1851_v29 }
  0x23   :  { %548 = vmatmul.mubr.bf16.vlgmr.msra.gmra.mrb[0].mxu0 %v2922_v1  ;;  %243 = vmatprep.mubr.bf16.mxu1 %v2922_v1 }
  0x24   :  { %635 = vmatpush1.bf16.msra.mxu0 %v2124_v4  ;;  %666 = vmatprep.mubr.bf16.mxu0 %v2922_v1 }
  0x25   :  { %636 = vmatprep.subr.bf16.mxu0 %v2134_v6 }
  0x28   :  { %637 = vmatpush1.bf16.msra.mxu0 %v2142_v8 }
  0x29   :  { %638 = vmatprep.subr.bf16.mxu0 %v2158_v12 }
  0x2a   :  { %1706 = vmatmul.mubr.msk.bf16.vlgmr.msra.gmra.mrb[16].mxu1 %vm125_vm0, %v1824_v9 }
  0x2b   :  { %557 = vmatpush1.bf16.msra.mxu1 %v2264_v30  ;;  %253 = vmatprep.mubr.bf16.mxu1 %v2922_v1 }
  0x2c   :  { %558 = vmatprep.subr.bf16.mxu1 %v2270_v31  ;;  %639 = vmatpush1.bf16.msra.mxu0 %v2163_v13 }
  0x2d   :  { %640 = vmatprep.subr.bf16.mxu0 %v2168_v14 }
  0x2f   :  { %559 = vmatpush1.bf16.msra.mxu1 %v2278_v32 }
  0x30   :  { %560 = vmatprep.subr.bf16.mxu1 %v2285_v33  ;;  %641 = vmatpush1.bf16.msra.mxu0 %v2176_v15 }
  0x31   :  { %642 = vmatprep.subr.bf16.mxu0 %v2183_v16 }
  0x32   :  { %1707 = vmatmul.mubr.msk.bf16.gmra.mrb[20].mxu1 %vm125_vm0, %v1834_v17 }
  0x33   :  { %561 = vmatpush1.bf16.msra.mxu1 %v2293_v34  ;;  %263 = vmatprep.mubr.bf16.mxu1 %v2922_v1 }
  0x34   :  { %562 = vmatprep.subr.bf16.mxu1 %v2299_v35  ;;  %643 = vmatpush1.bf16.msra.mxu0 %v2191_v18 }
  0x35   :  { %644 = vmatprep.subr.bf16.mxu0 %v2201_v20 }
  0x37   :  { %563 = vmatpush1.bf16.msra.mxu1 %v2308_v36 }
  0x38   :  { %564 = vmatprep.subr.bf16.mxu1 %v2315_v37  ;;  %645 = vmatpush1.bf16.msra.mxu0 %v2210_v22 }
  0x39   :  { %646 = vmatprep.subr.bf16.mxu0 %v2223_v24 }
  0x3a   :  { %1708 = vmatmul.mubr.msk.bf16.gmra.mrb[24].mxu1 %vm125_vm0, %v1841_v25 }
  0x3b   :  { %565 = vmatpush1.bf16.msra.mxu1 %v2323_v38  ;;  %273 = vmatprep.mubr.bf16.mxu1 %v2922_v1 }
  0x3c   :  { %566 = vmatprep.subr.bf16.mxu1 %v2329_v39  ;;  %647 = vmatpush1.bf16.msra.mxu0 %v2233_v26 }
  0x3d   :  { %648 = vmatprep.subr.bf16.mxu0 %v2239_v27 }
  0x3f   :  { %567 = vmatpush1.bf16.msra.mxu1 %v2338_v40 }
  0x40   :  { %568 = vmatprep.subr.bf16.mxu1 %v2345_v41  ;;  %649 = vmatpush1.bf16.msra.mxu0 %v2246_v28 }
  0x41   :  { %754 = vmatprep.subr.bf16.mxu0 %v2116_v2 }
  0x42   :  { %1709 = vmatmul.mubr.msk.bf16.gmra.mrb[28].mxu1 %vm125_vm0, %v1851_v29 }
  0x43   :  { %569 = vmatpush1.bf16.msra.mxu1 %v2353_v42  ;;  %588 = vmatprep.mubr.bf16.mxu1 %v2922_v1 }
  0x44   :  { %570 = vmatprep.subr.bf16.mxu1 %v2359_v43 }
  0x47   :  { %571 = vmatpush1.bf16.msra.mxu1 %v2368_v44 }
  0x48   :  { %675 = vmatprep.subr.bf16.mxu1 %v2217_v23 }
  0x4a   :  { %589 = vmatmul.mubr.bf16.vlgmr.msra.gmra.mrb[32].mxu1 %v2922_v1 }
  0x4b   :  { %676 = vmatpush1.bf16.msra.mxu1 %v2264_v30  ;;  %707 = vmatprep.mubr.bf16.mxu1 %v2922_v1 }
  0x4c   :  { %677 = vmatprep.subr.bf16.mxu1 %v2270_v31 }
  0x4f   :  { %678 = vmatpush1.bf16.msra.mxu1 %v2278_v32 }
  0x50   :  { %679 = vmatprep.subr.bf16.mxu1 %v2285_v33 }
  0x53   :  { %680 = vmatpush1.bf16.msra.mxu1 %v2293_v34 }
  0x54   :  { %681 = vmatprep.subr.bf16.mxu1 %v2299_v35 }
  0x57   :  { %682 = vmatpush1.bf16.msra.mxu1 %v2308_v36 }
  0x58   :  { %683 = vmatprep.subr.bf16.mxu1 %v2315_v37 }
  0x5b   :  { %684 = vmatpush1.bf16.msra.mxu1 %v2323_v38 }
  0x5c   :  { %685 = vmatprep.subr.bf16.mxu1 %v2329_v39 }
  0x5f   :  { %686 = vmatpush1.bf16.msra.mxu1 %v2338_v40 }
  0x60   :  { %687 = vmatprep.subr.bf16.mxu1 %v2345_v41 }
  0x63   :  { %688 = vmatpush1.bf16.msra.mxu1 %v2353_v42 }
  0x64   :  { %689 = vmatprep.subr.bf16.mxu1 %v2359_v43 }
  0x67   :  { %690 = vmatpush1.bf16.msra.mxu1 %v2368_v44 }
  0x68   :  { %795 = vmatprep.subr.bf16.mxu1 %v2217_v23 }
  0xdd   :  { %v172_v50 = vpop.f32.mrb[0].mxu1 }
  0xde   :  { %v174_v52 = vpop.f32.mrb[1].mxu1  ;;  %v173_v25 = vadd.f32 %v172_v50, %v48_v51  ;;  %v55_v50 = vsub.s32 2, %v46_v46 }
  0xdf   :  { %v176_v54 = vpop.f32.mrb[2].mxu1  ;;  %v175_v29 = vadd.f32 %v174_v52, %v52_v53  ;;  %v59_v52 = vsub.s32 3, %v46_v46 }
  0xe0   :  { %v2395_v55 = vadd.f32 %v176_v54, %v48_v51  ;;  %v178_v56 = vpop.f32.mrb[3].mxu1 }
  0xe1   :  { %v2397_v57 = vadd.f32 %v178_v56, %v52_v53 }
  0xe5   :  { %v182_v58 = vpop.f32.mrb[4].mxu1 }
  0xe6   :  { %v2399_v59 = vadd.f32 %v182_v58, %v48_v51  ;;  %v184_v60 = vpop.f32.mrb[5].mxu1 }
  0xe7   :  { %v2401_v61 = vadd.f32 %v184_v60, %v52_v53  ;;  %v186_v62 = vpop.f32.mrb[6].mxu1 }
  0xe8   :  { %v2403_v63 = vadd.f32 %v186_v62, %v48_v51  ;;  %v188_v0 = vpop.f32.mrb[7].mxu1 }
  0xe9   :  { %v2405_v3 = vadd.f32 %v188_v0, %v52_v53 }
  0xeb   :  { %2924 = vst [vmem:[#allocation4_spill] sm:$0xff] %v2405_v3 }
  0xed   :  { %v192_v5 = vpop.f32.mrb[8].mxu1 }
  0xee   :  { %v2407_v7 = vadd.f32 %v192_v5, %v48_v51  ;;  %v194_v9 = vpop.f32.mrb[9].mxu1 }
  0xef   :  { %v2409_v10 = vadd.f32 %v194_v9, %v52_v53  ;;  %v196_v11 = vpop.f32.mrb[10].mxu1 }
  0xf0   :  { %2925 = vst [vmem:[#allocation5_spill] sm:$0xff] %v2407_v7  ;;  %v2411_v17 = vadd.f32 %v196_v11, %v48_v51  ;;  %v198_v19 = vpop.f32.mrb[11].mxu1 }
  0xf1   :  { %2926 = vst [vmem:[#allocation6_spill] sm:$0xff] %v2409_v10  ;;  %v2413_v21 = vadd.f32 %v198_v19, %v52_v53 }
  0xf2   :  { %2927 = vst [vmem:[#allocation7_spill] sm:$0xff] %v2411_v17  ;;  %v56_v17 = vrot.slane %v43_v48, %v55_v50 }
  0xf3   :  { %2928 = vst [vmem:[#allocation8_spill] sm:$0xff] %v2413_v21 }
  0xf5   :  { %v202_v45 = vpop.f32.mrb[12].mxu1 }
  0xf6   :  { %v549_v47 = vpop.f32.mrb[0].mxu0  ;;  %v2415_v49 = vadd.f32 %v202_v45, %v48_v51  ;;  %v204_v56 = vpop.f32.mrb[13].mxu1 }
  0xf7   :  { %v597_v54 = vadd.f32 %v549_v47, %v173_v25  ;;  %v551_v58 = vpop.f32.mrb[1].mxu0  ;;  %v2417_v60 = vadd.f32 %v204_v56, %v52_v53  ;;  %v206_v0 = vpop.f32.mrb[14].mxu1 }
  0xf8   :  { %2929 = vst [vmem:[#allocation9_spill] sm:$0xff] %v2415_v49  ;;  %v598_v62 = vadd.f32 %v551_v58, %v175_v29  ;;  %v553_v5 = vpop.f32.mrb[2].mxu0  ;;  %v2419_v9 = vadd.f32 %v206_v0, %v48_v51  ;;  %v208_v11 = vpop.f32.mrb[15].mxu1  ;;  %v60_v49 = vrot.slane %v43_v48, %v59_v52 }
  0xf9   :  { %2930 = vst [vmem:[#allocation10_spill] sm:$0xff] %v2417_v60  ;;  %v554_v1 = vpop.f32.mrb[3].mxu0  ;;  %v2421_v19 = vadd.f32 %v208_v11, %v52_v53  ;;  %v1742_v48 = vmul.f32 -1.442695, %v597_v54 }
  0xfa   :  { %2931 = vst [vmem:[#allocation11_spill] sm:$0xff] %v2419_v9  ;;  %v1743_v5 = vmul.f32 -1.442695, %v598_v62 }
  0xfb   :  { %2932 = vst [vmem:[#allocation12_spill] sm:$0xff] %v2421_v19 }
  0xfc   :  { %1884 = vpow2.f32 %v1743_v5 }
  0xfd   :  { %v245_v21 = vpop.f32.mrb[16].mxu1  ;;  %1886 = vpow2.f32 %v1742_v48 }
  0xfe   :  { %v247_v45 = vpop.f32.mrb[17].mxu1 }
  0xff   :  { %v249_v25 = vpop.f32.mrb[18].mxu1  ;;  %v248_v7 = vadd.f32 %v247_v45, %v60_v49 }
 0x100   :  { %v2423_v47 = vadd.f32 %v249_v25, %v56_v17  ;;  %v251_v56 = vpop.f32.mrb[19].mxu1 }
 0x101   :  { %v2425_v60 = vadd.f32 %v251_v56, %v60_v49 }
 0x105   :  { %v255_v29 = vpop.f32.mrb[20].mxu1 }
 0x106   :  { %v2427_v58 = vadd.f32 %v255_v29, %v56_v17  ;;  %v257_v51 = vpop.f32.mrb[21].mxu1 }
 0x107   :  { %v2429_v0 = vadd.f32 %v257_v51, %v60_v49  ;;  %v259_v1 = vpop.f32.mrb[22].mxu1 }
 0x108   :  { %v2431_v53 = vadd.f32 %v259_v1, %v56_v17  ;;  %v261_v46 = vpop.f32.mrb[23].mxu1 }
 0x109   :  { %v2433_v11 = vadd.f32 %v261_v46, %v60_v49  ;;  %v1885_v46 = vpop.eup %1884 }
 0x10a   :  { %v1887_v48 = vpop.eup %1886 }
 0x10b   :  { %2933 = vst [vmem:[#allocation13_spill] sm:$0xff] %v2433_v11 }
 0x10d   :  { %v265_v50 = vpop.f32.mrb[24].mxu1 }
 0x10e   :  { %v2435_v52 = vadd.f32 %v265_v50, %v56_v17  ;;  %v267_v25 = vpop.f32.mrb[25].mxu1 }
 0x10f   :  { %v2437_v56 = vadd.f32 %v267_v25, %v60_v49  ;;  %v269_v29 = vpop.f32.mrb[26].mxu1 }
 0x110   :  { %2934 = vst [vmem:[#allocation14_spill] sm:$0xff] %v2435_v52  ;;  %v2439_v19 = vadd.f32 %v269_v29, %v56_v17  ;;  %v271_v51 = vpop.f32.mrb[27].mxu1  ;;  %v604_v29 = vadd.f32 1.0, %v1887_v48 }
 0x111   :  { %2935 = vst [vmem:[#allocation15_spill] sm:$0xff] %v2437_v56  ;;  %v2441_v9 = vadd.f32 %v271_v51, %v60_v49  ;;  %v610_v56 = vadd.f32 1.0, %v1885_v46 }
 0x112   :  { %2936 = vst [vmem:[#allocation16_spill] sm:$0xff] %v2439_v19  ;;  %v246_v19 = vadd.f32 %v245_v21, %v56_v17 }
 0x113   :  { %2937 = vst [vmem:[#allocation17_spill] sm:$0xff] %v2441_v9  ;;  %1888 = vrcp.f32 %v610_v56 }
 0x114   :  { %1890 = vrcp.f32 %v604_v29 }
 0x115   :  { %v275_v1 = vpop.f32.mrb[28].mxu1 }
 0x116   :  { %v2443_v10 = vadd.f32 %v275_v1, %v56_v17  ;;  %v277_v62 = vpop.f32.mrb[29].mxu1 }
 0x117   :  { %v2445_v54 = vadd.f32 %v277_v62, %v60_v49  ;;  %v279_v5 = vpop.f32.mrb[30].mxu1 }
 0x118   :  { %2938 = vst [vmem:[#allocation18_spill] sm:$0xff] %v2443_v10  ;;  %v2447_v50 = vadd.f32 %v279_v5, %v56_v17  ;;  %v281_v52 = vpop.f32.mrb[31].mxu1 }
 0x119   :  { %2939 = vst [vmem:[#allocation19_spill] sm:$0xff] %v2445_v54  ;;  %v2449_v25 = vadd.f32 %v281_v52, %v60_v49 }
 0x11a   :  { %2940 = vst [vmem:[#allocation20_spill] sm:$0xff] %v2447_v50 }
 0x11b   :  { %2941 = vst [vmem:[#allocation21_spill] sm:$0xff] %v2449_v25 }
 0x11d   :  { %v590_v51 = vpop.f32.mrb[32].mxu1  ;;  %v1889_v5 = vpop.eup %1888 }
 0x11e   :  { %v599_v9 = vadd.f32 %v590_v51, %v246_v19  ;;  %v592_v1 = vpop.f32.mrb[33].mxu1  ;;  %v1891_v50 = vpop.eup %1890  ;;  %v620_v52 = vmul.f32 0.0, %v1889_v5 }
 0x11f   :  { %v600_v10 = vadd.f32 %v592_v1, %v248_v7  ;;  %v594_v11 = vpop.f32.mrb[34].mxu1 }
 0x120   :  { %1892 = vtanh.f32 %v599_v9  ;;  %v595_v62 = vpop.f32.mrb[35].mxu1 }
 0x121   :  { %v1744_v54 = vmul.f32 -1.442695, %v600_v10 }
 0x123   :  { %1894 = vpow2.f32 %v1744_v54 }
 0x12a   :  { %v1893_v3 = vpop.eup %1892 }
 0x12b   :  { %v621_v25 = vmul.f32 %v1893_v3, %v1891_v50  ;;  %v2942_v3 = vmov 0  }
 0x12d   :  { %v1895_v46 = vpop.eup %1894  ;;  %v2451_v48 = vadd.f32 %v621_v25, %v620_v52 }
 0x12e   :  { %v617_v17 = vadd.f32 1.0, %v1895_v46 }
 0x12f   :  { %1896 = vtanh.f32 %v2451_v48 }
 0x130   :  { %1898 = vrcp.f32 %v617_v17 }
 0x139   :  { %v1897_v21 = vpop.eup %1896 }
 0x13a   :  { %v1899_v49 = vpop.eup %1898 }
 0x13b   :  { %v2454_v7 = vmul.f32 %v1899_v49, %v1897_v21 }
 0x13d   :  { %v633_v10 = vpack.c.bf16 %v2454_v7, %v2454_v7 }
 0x13f   :  { %667 = vmatmul.mubr.bf16.vlgmr.msra.gmra.mrb[4].mxu0 %v633_v10  ;;  %708 = vmatmul.mubr.bf16.vlgmr.msra.gmra.mrb[36].mxu1 %v633_v10 }
 0x140   :  { %755 = vmatpush1.bf16.msra.mxu0 %v2124_v4  ;;  %796 = vmatpush1.bf16.msra.mxu1 %v2264_v30 }
 0x141   :  { %756 = vmatprep.subr.bf16.mxu0 %v2134_v6  ;;  %797 = vmatprep.subr.bf16.mxu1 %v2270_v31 }
 0x142   :  { %786 = vmatprep.mubr.bf16.mxu0 %v2942_v3  ;;  %827 = vmatprep.mubr.bf16.mxu1 %v2942_v3 }
 0x144   :  { %757 = vmatpush1.bf16.msra.mxu0 %v2142_v8  ;;  %798 = vmatpush1.bf16.msra.mxu1 %v2278_v32 }
 0x145   :  { %758 = vmatprep.subr.bf16.mxu0 %v2158_v12  ;;  %799 = vmatprep.subr.bf16.mxu1 %v2285_v33 }
 0x148   :  { %759 = vmatpush1.bf16.msra.mxu0 %v2163_v13  ;;  %800 = vmatpush1.bf16.msra.mxu1 %v2293_v34 }
 0x149   :  { %760 = vmatprep.subr.bf16.mxu0 %v2168_v14  ;;  %801 = vmatprep.subr.bf16.mxu1 %v2299_v35 }
 0x14c   :  { %761 = vmatpush1.bf16.msra.mxu0 %v2176_v15  ;;  %802 = vmatpush1.bf16.msra.mxu1 %v2308_v36 }
 0x14d   :  { %762 = vmatprep.subr.bf16.mxu0 %v2183_v16  ;;  %803 = vmatprep.subr.bf16.mxu1 %v2315_v37 }
 0x150   :  { %763 = vmatpush1.bf16.msra.mxu0 %v2191_v18  ;;  %804 = vmatpush1.bf16.msra.mxu1 %v2323_v38 }
 0x151   :  { %764 = vmatprep.subr.bf16.mxu0 %v2201_v20  ;;  %805 = vmatprep.subr.bf16.mxu1 %v2329_v39 }
 0x154   :  { %765 = vmatpush1.bf16.msra.mxu0 %v2210_v22  ;;  %806 = vmatpush1.bf16.msra.mxu1 %v2338_v40 }
 0x155   :  { %766 = vmatprep.subr.bf16.mxu0 %v2223_v24  ;;  %807 = vmatprep.subr.bf16.mxu1 %v2345_v41 }
 0x158   :  { %767 = vmatpush1.bf16.msra.mxu0 %v2233_v26  ;;  %808 = vmatpush1.bf16.msra.mxu1 %v2353_v42 }
 0x159   :  { %768 = vmatprep.subr.bf16.mxu0 %v2239_v27  ;;  %809 = vmatprep.subr.bf16.mxu1 %v2359_v43 }
 0x15c   :  { %769 = vmatpush1.bf16.msra.mxu0 %v2246_v28  ;;  %810 = vmatpush1.bf16.msra.mxu1 %v2368_v44 }
 0x15d   :  { %874 = vmatprep.subr.bf16.mxu0 %v2116_v2  ;;  %915 = vmatprep.subr.bf16.mxu1 %v2217_v23 }
 0x212   :  { %v668_v9 = vpop.f32.mrb[4].mxu0  ;;  %v709_v19 = vpop.f32.mrb[36].mxu1 }
 0x213   :  { %v716_v45 = vadd.f32 %v668_v9, %v2395_v55  ;;  %v718_v11 = vadd.f32 %v709_v19, %v2423_v47  ;;  %v670_v56 = vpop.f32.mrb[5].mxu0  ;;  %v711_v54 = vpop.f32.mrb[37].mxu1 }
 0x214   :  { %v717_v50 = vadd.f32 %v670_v56, %v2397_v57  ;;  %v719_v25 = vadd.f32 %v711_v54, %v2425_v60  ;;  %v672_v29 = vpop.f32.mrb[6].mxu0  ;;  %v713_v51 = vpop.f32.mrb[38].mxu1 }
 0x215   :  { %v1745_v1 = vmul.f32 -1.442695, %v716_v45  ;;  %v673_v62 = vpop.f32.mrb[7].mxu0  ;;  %v714_v5 = vpop.f32.mrb[39].mxu1 }
 0x216   :  { %v1746_v52 = vmul.f32 -1.442695, %v717_v50  ;;  %v1747_v46 = vmul.f32 -1.442695, %v719_v25 }
 0x217   :  { %1900 = vpow2.f32 %v1745_v1 }
 0x218   :  { %1902 = vpow2.f32 %v1746_v52 }
 0x219   :  { %1904 = vpow2.f32 %v1747_v46 }
 0x21a   :  { %1906 = vtanh.f32 %v718_v11 }
 0x221   :  { %v1901_v17 = vpop.eup %1900 }
 0x222   :  { %v1903_v21 = vpop.eup %1902  ;;  %v723_v55 = vadd.f32 1.0, %v1901_v17 }
 0x223   :  { %v729_v47 = vadd.f32 1.0, %v1903_v21  ;;  %v1905_v57 = vpop.eup %1904 }
 0x224   :  { %1908 = vrcp.f32 %v723_v55  ;;  %v1907_v49 = vpop.eup %1906  ;;  %v736_v19 = vadd.f32 1.0, %v1905_v57 }
 0x225   :  { %1910 = vrcp.f32 %v729_v47 }
 0x226   :  { %1912 = vrcp.f32 %v736_v19 }
 0x22e   :  { %v1909_v60 = vpop.eup %1908 }
 0x22f   :  { %v1911_v10 = vpop.eup %1910  ;;  %v740_v9 = vmul.f32 %v1909_v60, %v1907_v49 }
 0x230   :  { %v739_v45 = vmul.f32 %v1911_v10, %v2451_v48  ;;  %v1913_v54 = vpop.eup %1912 }
 0x232   :  { %v2497_v56 = vadd.f32 %v740_v9, %v739_v45 }
 0x234   :  { %1914 = vtanh.f32 %v2497_v56 }
 0x23e   :  { %v1915_v50 = vpop.eup %1914 }
 0x23f   :  { %v2500_v25 = vmul.f32 %v1915_v50, %v1913_v54 }
 0x241   :  { %v753_v11 = vpack.c.bf16 %v2500_v25, %v2500_v25 }
 0x243   :  { %787 = vmatmul.mubr.bf16.vlgmr.msra.gmra.mrb[8].mxu0 %v753_v11  ;;  %828 = vmatmul.mubr.bf16.vlgmr.msra.gmra.mrb[40].mxu1 %v753_v11 }
 0x244   :  { %875 = vmatpush1.bf16.msra.mxu0 %v2124_v4  ;;  %916 = vmatpush1.bf16.msra.mxu1 %v2264_v30 }
 0x245   :  { %876 = vmatprep.subr.bf16.mxu0 %v2134_v6  ;;  %917 = vmatprep.subr.bf16.mxu1 %v2270_v31 }
 0x246   :  { %906 = vmatprep.mubr.bf16.mxu0 %v2942_v3  ;;  %947 = vmatprep.mubr.bf16.mxu1 %v2942_v3 }
 0x248   :  { %877 = vmatpush1.bf16.msra.mxu0 %v2142_v8  ;;  %918 = vmatpush1.bf16.msra.mxu1 %v2278_v32 }
 0x249   :  { %878 = vmatprep.subr.bf16.mxu0 %v2158_v12  ;;  %919 = vmatprep.subr.bf16.mxu1 %v2285_v33 }
 0x24c   :  { %879 = vmatpush1.bf16.msra.mxu0 %v2163_v13  ;;  %920 = vmatpush1.bf16.msra.mxu1 %v2293_v34 }
 0x24d   :  { %880 = vmatprep.subr.bf16.mxu0 %v2168_v14  ;;  %921 = vmatprep.subr.bf16.mxu1 %v2299_v35 }
 0x250   :  { %881 = vmatpush1.bf16.msra.mxu0 %v2176_v15  ;;  %922 = vmatpush1.bf16.msra.mxu1 %v2308_v36 }
 0x251   :  { %882 = vmatprep.subr.bf16.mxu0 %v2183_v16  ;;  %923 = vmatprep.subr.bf16.mxu1 %v2315_v37 }
 0x254   :  { %883 = vmatpush1.bf16.msra.mxu0 %v2191_v18  ;;  %924 = vmatpush1.bf16.msra.mxu1 %v2323_v38 }
 0x255   :  { %884 = vmatprep.subr.bf16.mxu0 %v2201_v20  ;;  %925 = vmatprep.subr.bf16.mxu1 %v2329_v39 }
 0x258   :  { %885 = vmatpush1.bf16.msra.mxu0 %v2210_v22  ;;  %926 = vmatpush1.bf16.msra.mxu1 %v2338_v40 }
 0x259   :  { %886 = vmatprep.subr.bf16.mxu0 %v2223_v24  ;;  %927 = vmatprep.subr.bf16.mxu1 %v2345_v41 }
 0x25c   :  { %887 = vmatpush1.bf16.msra.mxu0 %v2233_v26  ;;  %928 = vmatpush1.bf16.msra.mxu1 %v2353_v42 }
 0x25d   :  { %888 = vmatprep.subr.bf16.mxu0 %v2239_v27  ;;  %929 = vmatprep.subr.bf16.mxu1 %v2359_v43 }
 0x260   :  { %889 = vmatpush1.bf16.msra.mxu0 %v2246_v28  ;;  %930 = vmatpush1.bf16.msra.mxu1 %v2368_v44 }
 0x261   :  { %994 = vmatprep.subr.bf16.mxu0 %v2116_v2  ;;  %1035 = vmatprep.subr.bf16.mxu1 %v2217_v23 }
 0x316   :  { %v788_v48 = vpop.f32.mrb[8].mxu0  ;;  %v829_v29 = vpop.f32.mrb[40].mxu1 }
 0x317   :  { %v836_v51 = vadd.f32 %v788_v48, %v2399_v59  ;;  %v838_v1 = vadd.f32 %v829_v29, %v2427_v58  ;;  %v790_v62 = vpop.f32.mrb[9].mxu0  ;;  %v831_v5 = vpop.f32.mrb[41].mxu1 }
 0x318   :  { %v837_v52 = vadd.f32 %v790_v62, %v2401_v61  ;;  %v839_v46 = vadd.f32 %v831_v5, %v2429_v0  ;;  %v792_v17 = vpop.f32.mrb[10].mxu0  ;;  %v833_v21 = vpop.f32.mrb[42].mxu1 }
 0x319   :  { %v1748_v55 = vmul.f32 -1.442695, %v836_v51  ;;  %v793_v47 = vpop.f32.mrb[11].mxu0  ;;  %v834_v57 = vpop.f32.mrb[43].mxu1  ;;  %v2944_v21 = vld [vmem:[#allocation13_spill] sm:$0xff] }
 0x31a   :  { %v1749_v49 = vmul.f32 -1.442695, %v837_v52  ;;  %v1750_v60 = vmul.f32 -1.442695, %v839_v46  ;;  %v2943_v46 = vld [vmem:[#allocation4_spill] sm:$0xff] }
 0x31b   :  { %1916 = vpow2.f32 %v1748_v55 }
 0x31c   :  { %1918 = vpow2.f32 %v1749_v49 }
 0x31d   :  { %1920 = vpow2.f32 %v1750_v60 }
 0x31e   :  { %1922 = vtanh.f32 %v838_v1 }
 0x325   :  { %v1917_v10 = vpop.eup %1916 }
 0x326   :  { %v1919_v9 = vpop.eup %1918  ;;  %v843_v59 = vadd.f32 1.0, %v1917_v10 }
 0x327   :  { %v849_v58 = vadd.f32 1.0, %v1919_v9  ;;  %v1921_v61 = vpop.eup %1920 }
 0x328   :  { %1924 = vrcp.f32 %v843_v59  ;;  %v1923_v19 = vpop.eup %1922  ;;  %v856_v50 = vadd.f32 1.0, %v1921_v61 }
 0x329   :  { %1926 = vrcp.f32 %v849_v58 }
 0x32a   :  { %1928 = vrcp.f32 %v856_v50 }
 0x332   :  { %v1925_v0 = vpop.eup %1924 }
 0x333   :  { %v1927_v45 = vpop.eup %1926  ;;  %v860_v54 = vmul.f32 %v1925_v0, %v1923_v19 }
 0x334   :  { %v859_v11 = vmul.f32 %v1927_v45, %v2497_v56  ;;  %v1929_v29 = vpop.eup %1928 }
 0x336   :  { %v2543_v48 = vadd.f32 %v860_v54, %v859_v11 }
 0x338   :  { %1930 = vtanh.f32 %v2543_v48 }
 0x342   :  { %v1931_v51 = vpop.eup %1930 }
 0x343   :  { %v2546_v62 = vmul.f32 %v1931_v51, %v1929_v29 }
 0x345   :  { %v873_v1 = vpack.c.bf16 %v2546_v62, %v2546_v62 }
 0x347   :  { %907 = vmatmul.mubr.bf16.vlgmr.msra.gmra.mrb[12].mxu0 %v873_v1  ;;  %948 = vmatmul.mubr.bf16.vlgmr.msra.gmra.mrb[44].mxu1 %v873_v1 }
 0x348   :  { %995 = vmatpush1.bf16.msra.mxu0 %v2124_v4  ;;  %1036 = vmatpush1.bf16.msra.mxu1 %v2264_v30 }
 0x349   :  { %996 = vmatprep.subr.bf16.mxu0 %v2134_v6  ;;  %1037 = vmatprep.subr.bf16.mxu1 %v2270_v31 }
 0x34a   :  { %1026 = vmatprep.mubr.bf16.mxu0 %v2942_v3  ;;  %1067 = vmatprep.mubr.bf16.mxu1 %v2942_v3 }
 0x34c   :  { %997 = vmatpush1.bf16.msra.mxu0 %v2142_v8  ;;  %1038 = vmatpush1.bf16.msra.mxu1 %v2278_v32 }
 0x34d   :  { %998 = vmatprep.subr.bf16.mxu0 %v2158_v12  ;;  %1039 = vmatprep.subr.bf16.mxu1 %v2285_v33 }
 0x350   :  { %999 = vmatpush1.bf16.msra.mxu0 %v2163_v13  ;;  %1040 = vmatpush1.bf16.msra.mxu1 %v2293_v34 }
 0x351   :  { %1000 = vmatprep.subr.bf16.mxu0 %v2168_v14  ;;  %1041 = vmatprep.subr.bf16.mxu1 %v2299_v35 }
 0x354   :  { %1001 = vmatpush1.bf16.msra.mxu0 %v2176_v15  ;;  %1042 = vmatpush1.bf16.msra.mxu1 %v2308_v36 }
 0x355   :  { %1002 = vmatprep.subr.bf16.mxu0 %v2183_v16  ;;  %1043 = vmatprep.subr.bf16.mxu1 %v2315_v37 }
 0x358   :  { %1003 = vmatpush1.bf16.msra.mxu0 %v2191_v18  ;;  %1044 = vmatpush1.bf16.msra.mxu1 %v2323_v38 }
 0x359   :  { %1004 = vmatprep.subr.bf16.mxu0 %v2201_v20  ;;  %1045 = vmatprep.subr.bf16.mxu1 %v2329_v39 }
 0x35c   :  { %1005 = vmatpush1.bf16.msra.mxu0 %v2210_v22  ;;  %1046 = vmatpush1.bf16.msra.mxu1 %v2338_v40 }
 0x35d   :  { %1006 = vmatprep.subr.bf16.mxu0 %v2223_v24  ;;  %1047 = vmatprep.subr.bf16.mxu1 %v2345_v41 }
 0x360   :  { %1007 = vmatpush1.bf16.msra.mxu0 %v2233_v26  ;;  %1048 = vmatpush1.bf16.msra.mxu1 %v2353_v42 }
 0x361   :  { %1008 = vmatprep.subr.bf16.mxu0 %v2239_v27  ;;  %1049 = vmatprep.subr.bf16.mxu1 %v2359_v43 }
 0x364   :  { %1009 = vmatpush1.bf16.msra.mxu0 %v2246_v28  ;;  %1050 = vmatpush1.bf16.msra.mxu1 %v2368_v44 }
 0x365   :  { %1114 = vmatprep.subr.bf16.mxu0 %v2116_v2  ;;  %1155 = vmatprep.subr.bf16.mxu1 %v2217_v23 }
 0x41a   :  { %v908_v4 = vpop.f32.mrb[12].mxu0  ;;  %v949_v6 = vpop.f32.mrb[44].mxu1 }
 0x41b   :  { %v956_v8 = vadd.f32 %v908_v4, %v2403_v63  ;;  %v958_v56 = vadd.f32 %v949_v6, %v2431_v53  ;;  %v910_v5 = vpop.f32.mrb[13].mxu0  ;;  %v951_v52 = vpop.f32.mrb[45].mxu1 }
 0x41c   :  { %v957_v17 = vadd.f32 %v910_v5, %v2943_v46  ;;  %v959_v55 = vadd.f32 %v951_v52, %v2944_v21  ;;  %v912_v47 = vpop.f32.mrb[14].mxu0  ;;  %v953_v57 = vpop.f32.mrb[46].mxu1 }
 0x41d   :  { %v1751_v49 = vmul.f32 -1.442695, %v956_v8  ;;  %v913_v60 = vpop.f32.mrb[15].mxu0  ;;  %v954_v10 = vpop.f32.mrb[47].mxu1  ;;  %v2599_v8 = vld [vmem:[%s2914_s2] ss:$16 sps:$4 sm:$0xff]  }
 0x41e   :  { %v1752_v2 = vmul.f32 -1.442695, %v957_v17  ;;  %v1753_v9 = vmul.f32 -1.442695, %v959_v55 }
 0x41f   :  { %1932 = vpow2.f32 %v1751_v49 }
 0x420   :  { %1934 = vpow2.f32 %v1752_v2 }
 0x421   :  { %1936 = vpow2.f32 %v1753_v9 }
 0x422   :  { %1938 = vtanh.f32 %v958_v56  ;;  %v2615_v56 = vld [vmem:[%s2914_s2 + $0x20] ss:$16 sps:$4 sm:$0xff]  }
 0x429   :  { %v1933_v59 = vpop.eup %1932 }
 0x42a   :  { %v1935_v58 = vpop.eup %1934  ;;  %v963_v63 = vadd.f32 1.0, %v1933_v59 }
 0x42b   :  { %v969_v53 = vadd.f32 1.0, %v1935_v58  ;;  %v1937_v61 = vpop.eup %1936 }
 0x42c   :  { %1940 = vrcp.f32 %v963_v63  ;;  %v1939_v19 = vpop.eup %1938  ;;  %v976_v50 = vadd.f32 1.0, %v1937_v61 }
 0x42d   :  { %1942 = vrcp.f32 %v969_v53 }
 0x42e   :  { %1944 = vrcp.f32 %v976_v50 }
 0x436   :  { %v1941_v0 = vpop.eup %1940 }
 0x437   :  { %v1943_v45 = vpop.eup %1942  ;;  %v980_v54 = vmul.f32 %v1941_v0, %v1939_v19 }
 0x438   :  { %v979_v11 = vmul.f32 %v1943_v45, %v2543_v48  ;;  %v1945_v51 = vpop.eup %1944  ;;  %v2606_v48 = vld [vmem:[%s2914_s2 + $0x24] ss:$16 sps:$4 sm:$0xff]  }
 0x43a   :  { %v2589_v29 = vadd.f32 %v980_v54, %v979_v11  ;;  %v2673_v11 = vld [vmem:[%s2914_s2 + $0x44] ss:$16 sps:$4 sm:$0xff]  }
 0x43c   :  { %1946 = vtanh.f32 %v2589_v29 }
 0x446   :  { %v1947_v1 = vpop.eup %1946 }
 0x447   :  { %v2592_v4 = vmul.f32 %v1947_v1, %v1945_v51  ;;  %v2949_v51 = vld [vmem:[#allocation7_spill] sm:$0xff]  ;;  %v2950_v1 = vld [vmem:[#allocation16_spill] sm:$0xff] }
 0x449   :  { %v993_v6 = vpack.c.bf16 %v2592_v4, %v2592_v4 }
 0x44b   :  { %1027 = vmatmul.mubr.bf16.vlgmr.msra.gmra.mrb[16].mxu0 %v993_v6  ;;  %1068 = vmatmul.mubr.bf16.vlgmr.msra.gmra.mrb[48].mxu1 %v993_v6 }
 0x44c   :  { %1115 = vmatpush1.bf16.msra.mxu0 %v2599_v8  ;;  %1156 = vmatpush1.bf16.msra.mxu1 %v2264_v30 }
 0x44d   :  { %1116 = vmatprep.subr.bf16.mxu0 %v2606_v48  ;;  %1157 = vmatprep.subr.bf16.mxu1 %v2270_v31 }
 0x44e   :  { %1146 = vmatprep.mubr.bf16.mxu0 %v2942_v3  ;;  %1187 = vmatprep.mubr.bf16.mxu1 %v2942_v3 }
 0x450   :  { %1117 = vmatpush1.bf16.msra.mxu0 %v2615_v56  ;;  %1158 = vmatpush1.bf16.msra.mxu1 %v2278_v32 }
 0x451   :  { %1118 = vmatprep.subr.bf16.mxu0 %v2158_v12  ;;  %1159 = vmatprep.subr.bf16.mxu1 %v2285_v33  ;;  %v2646_v12 = vld [vmem:[%s2914_s2 + $0x4] ss:$16 sps:$4 sm:$0xff]  }
 0x454   :  { %1119 = vmatpush1.bf16.msra.mxu0 %v2163_v13  ;;  %1160 = vmatpush1.bf16.msra.mxu1 %v2293_v34 }
 0x455   :  { %1120 = vmatprep.subr.bf16.mxu0 %v2168_v14  ;;  %1161 = vmatprep.subr.bf16.mxu1 %v2299_v35 }
 0x458   :  { %1121 = vmatpush1.bf16.msra.mxu0 %v2176_v15  ;;  %1162 = vmatpush1.bf16.msra.mxu1 %v2308_v36  ;;  %v2945_v15 = vld [vmem:[#allocation5_spill] sm:$0xff] }
 0x459   :  { %1122 = vmatprep.subr.bf16.mxu0 %v2183_v16  ;;  %1163 = vmatprep.subr.bf16.mxu1 %v2315_v37 }
 0x45c   :  { %1123 = vmatpush1.bf16.msra.mxu0 %v2191_v18  ;;  %1164 = vmatpush1.bf16.msra.mxu1 %v2323_v38  ;;  %v2946_v18 = vld [vmem:[#allocation14_spill] sm:$0xff] }
 0x45d   :  { %1124 = vmatprep.subr.bf16.mxu0 %v2201_v20  ;;  %1165 = vmatprep.subr.bf16.mxu1 %v2329_v39 }
 0x460   :  { %1125 = vmatpush1.bf16.msra.mxu0 %v2210_v22  ;;  %1166 = vmatpush1.bf16.msra.mxu1 %v2338_v40 }
 0x461   :  { %1126 = vmatprep.subr.bf16.mxu0 %v2223_v24  ;;  %1167 = vmatprep.subr.bf16.mxu1 %v2345_v41 }
 0x464   :  { %1127 = vmatpush1.bf16.msra.mxu0 %v2233_v26  ;;  %1168 = vmatpush1.bf16.msra.mxu1 %v2353_v42  ;;  %v2947_v26 = vld [vmem:[#allocation6_spill] sm:$0xff] }
 0x465   :  { %1128 = vmatprep.subr.bf16.mxu0 %v2239_v27  ;;  %1169 = vmatprep.subr.bf16.mxu1 %v2359_v43 }
 0x468   :  { %1129 = vmatpush1.bf16.msra.mxu0 %v2246_v28  ;;  %1170 = vmatpush1.bf16.msra.mxu1 %v2368_v44  ;;  %v2948_v28 = vld [vmem:[#allocation15_spill] sm:$0xff] }
 0x469   :  { %1234 = vmatprep.subr.bf16.mxu0 %v2646_v12  ;;  %1275 = vmatprep.subr.bf16.mxu1 %v2217_v23 }
 0x51e   :  { %v1028_v13 = vpop.f32.mrb[16].mxu0  ;;  %v1069_v14 = vpop.f32.mrb[48].mxu1 }
 0x51f   :  { %v1076_v16 = vadd.f32 %v1028_v13, %v2945_v15  ;;  %v1078_v20 = vadd.f32 %v1069_v14, %v2946_v18  ;;  %v1030_v22 = vpop.f32.mrb[17].mxu0  ;;  %v1071_v24 = vpop.f32.mrb[49].mxu1  ;;  %v2951_v15 = vld [vmem:[#allocation8_spill] sm:$0xff]  ;;  %v2952_v18 = vld [vmem:[#allocation17_spill] sm:$0xff] }
 0x520   :  { %v1077_v27 = vadd.f32 %v1030_v22, %v2947_v26  ;;  %v1079_v5 = vadd.f32 %v1071_v24, %v2948_v28  ;;  %v1032_v52 = vpop.f32.mrb[18].mxu0  ;;  %v1073_v46 = vpop.f32.mrb[50].mxu1 }
 0x521   :  { %v1754_v17 = vmul.f32 -1.442695, %v1076_v16  ;;  %v1033_v21 = vpop.f32.mrb[19].mxu0  ;;  %v1074_v55 = vpop.f32.mrb[51].mxu1 }
 0x522   :  { %v1755_v47 = vmul.f32 -1.442695, %v1077_v27  ;;  %v1756_v23 = vmul.f32 -1.442695, %v1079_v5 }
 0x523   :  { %1948 = vpow2.f32 %v1754_v17 }
 0x524   :  { %1950 = vpow2.f32 %v1755_v47 }
 0x525   :  { %1952 = vpow2.f32 %v1756_v23 }
 0x526   :  { %1954 = vtanh.f32 %v1078_v20 }
 0x52d   :  { %v1949_v57 = vpop.eup %1948 }
 0x52e   :  { %v1951_v49 = vpop.eup %1950  ;;  %v1083_v60 = vadd.f32 1.0, %v1949_v57 }
 0x52f   :  { %v1089_v10 = vadd.f32 1.0, %v1951_v49  ;;  %v1953_v2 = vpop.eup %1952 }
 0x530   :  { %1956 = vrcp.f32 %v1083_v60  ;;  %v1955_v9 = vpop.eup %1954  ;;  %v1096_v53 = vadd.f32 1.0, %v1953_v2 }
 0x531   :  { %1958 = vrcp.f32 %v1089_v10 }
 0x532   :  { %1960 = vrcp.f32 %v1096_v53  ;;  %v2048_v53 = vld [vmem:[%s2914_s2 + $0x2c] ss:$16 sps:$4 sm:$0xff]  }
 0x53a   :  { %v1957_v59 = vpop.eup %1956 }
 0x53b   :  { %v1959_v58 = vpop.eup %1958  ;;  %v1100_v63 = vmul.f32 %v1957_v59, %v1955_v9 }
 0x53c   :  { %v1099_v61 = vmul.f32 %v1959_v58, %v2589_v29  ;;  %v1961_v0 = vpop.eup %1960 }
 0x53e   :  { %v2655_v19 = vadd.f32 %v1100_v63, %v1099_v61  ;;  %v2047_v63 = vld [vmem:[%s2914_s2 + $0x8] ss:$16 sps:$4 sm:$0xff]  }
 0x53f   :  { %v2053_v61 = vld [vmem:[%s2914_s2 + $0x68] ss:$16 sps:$4 sm:$0xff]  }
 0x540   :  { %1962 = vtanh.f32 %v2655_v19 }
 0x54a   :  { %v1963_v45 = vpop.eup %1962 }
 0x54b   :  { %v2658_v54 = vmul.f32 %v1963_v45, %v1961_v0  ;;  %v2055_v0 = vld [vmem:[%s2914_s2 + $0x88] ss:$16 sps:$4 sm:$0xff]   ;;  %v2056_v45 = vld [vmem:[%s2914_s2 + $0xac] ss:$16 sps:$4 sm:$0xff]  }
 0x54d   :  { %v1113_v50 = vpack.c.bf16 %v2658_v54, %v2658_v54 }
 0x54f   :  { %1147 = vmatmul.mubr.bf16.vlgmr.msra.gmra.mrb[20].mxu0 %v1113_v50  ;;  %1188 = vmatmul.mubr.bf16.vlgmr.msra.gmra.mrb[52].mxu1 %v1113_v50  ;;  %v2057_v50 = vld [vmem:[%s2914_s2 + $0xa8] ss:$16 sps:$4 sm:$0xff]  }
 0x550   :  { %1235 = vmatpush1.bf16.msra.mxu0 %v2599_v8  ;;  %1276 = vmatpush1.bf16.msra.mxu1 %v2264_v30  ;;  %v2680_v30 = vld [vmem:[%s2914_s2 + $0x40] ss:$16 sps:$4 sm:$0xff]  }
 0x551   :  { %1236 = vmatprep.subr.bf16.mxu0 %v2606_v48  ;;  %1277 = vmatprep.subr.bf16.mxu1 %v2270_v31  ;;  %v2687_v31 = vld [vmem:[%s2914_s2 + $0x64] ss:$16 sps:$4 sm:$0xff]  }
 0x552   :  { %1266 = vmatprep.mubr.bf16.mxu0 %v2942_v3  ;;  %1307 = vmatprep.mubr.bf16.mxu1 %v2942_v3 }
 0x554   :  { %1237 = vmatpush1.bf16.msra.mxu0 %v2615_v56  ;;  %1278 = vmatpush1.bf16.msra.mxu1 %v2278_v32  ;;  %v2694_v32 = vld [vmem:[%s2914_s2 + $0x60] ss:$16 sps:$4 sm:$0xff]  }
 0x555   :  { %1238 = vmatprep.subr.bf16.mxu0 %v2673_v11  ;;  %1279 = vmatprep.subr.bf16.mxu1 %v2285_v33  ;;  %v2701_v33 = vld [vmem:[%s2914_s2 + $0x84] ss:$16 sps:$4 sm:$0xff]  }
 0x558   :  { %1239 = vmatpush1.bf16.msra.mxu0 %v2680_v30  ;;  %1280 = vmatpush1.bf16.msra.mxu1 %v2293_v34  ;;  %v2708_v34 = vld [vmem:[%s2914_s2 + $0x80] ss:$16 sps:$4 sm:$0xff]  }
 0x559   :  { %1240 = vmatprep.subr.bf16.mxu0 %v2687_v31  ;;  %1281 = vmatprep.subr.bf16.mxu1 %v2299_v35  ;;  %v2715_v35 = vld [vmem:[%s2914_s2 + $0xa4] ss:$16 sps:$4 sm:$0xff]  }
 0x55c   :  { %1241 = vmatpush1.bf16.msra.mxu0 %v2694_v32  ;;  %1282 = vmatpush1.bf16.msra.mxu1 %v2308_v36  ;;  %v2722_v36 = vld [vmem:[%s2914_s2 + $0xa0] ss:$16 sps:$4 sm:$0xff]  }
 0x55d   :  { %1242 = vmatprep.subr.bf16.mxu0 %v2701_v33  ;;  %1283 = vmatprep.subr.bf16.mxu1 %v2315_v37  ;;  %v2729_v37 = vld [vmem:[%s2914_s2 + $0xc4] ss:$16 sps:$4 sm:$0xff]  }
 0x560   :  { %1243 = vmatpush1.bf16.msra.mxu0 %v2708_v34  ;;  %1284 = vmatpush1.bf16.msra.mxu1 %v2323_v38  ;;  %v2736_v38 = vld [vmem:[%s2914_s2 + $0xc0] ss:$16 sps:$4 sm:$0xff]  }
 0x561   :  { %1244 = vmatprep.subr.bf16.mxu0 %v2715_v35  ;;  %1285 = vmatprep.subr.bf16.mxu1 %v2329_v39  ;;  %v2743_v39 = vld [vmem:[%s2914_s2 + $0xe4] ss:$16 sps:$4 sm:$0xff]  }
 0x564   :  { %1245 = vmatpush1.bf16.msra.mxu0 %v2722_v36  ;;  %1286 = vmatpush1.bf16.msra.mxu1 %v2338_v40  ;;  %v2750_v40 = vld [vmem:[%s2914_s2 + $0xe0] ss:$16 sps:$4 sm:$0xff]  }
 0x565   :  { %1246 = vmatprep.subr.bf16.mxu0 %v2729_v37  ;;  %1287 = vmatprep.subr.bf16.mxu1 %v2345_v41  ;;  %v2046_v41 = vld [vmem:[%s2914_s2 + $0xc] ss:$16 sps:$4 sm:$0xff]  }
 0x568   :  { %1247 = vmatpush1.bf16.msra.mxu0 %v2736_v38  ;;  %1288 = vmatpush1.bf16.msra.mxu1 %v2353_v42 }
 0x569   :  { %1248 = vmatprep.subr.bf16.mxu0 %v2743_v39  ;;  %1289 = vmatprep.subr.bf16.mxu1 %v2359_v43 }
 0x56c   :  { %1249 = vmatpush1.bf16.msra.mxu0 %v2750_v40  ;;  %1290 = vmatpush1.bf16.msra.mxu1 %v2368_v44 }
 0x56d   :  { %1354 = vmatprep.subr.bf16.mxu0 %v2646_v12  ;;  %1395 = vmatprep.subr.bf16.mxu1 %v2046_v41 }
 0x622   :  { %v1148_v42 = vpop.f32.mrb[20].mxu0  ;;  %v1189_v29 = vpop.f32.mrb[52].mxu1 }
 0x623   :  { %v1196_v43 = vadd.f32 %v1148_v42, %v2949_v51  ;;  %v1198_v6 = vadd.f32 %v1189_v29, %v2950_v1  ;;  %v1150_v13 = vpop.f32.mrb[21].mxu0  ;;  %v1191_v14 = vpop.f32.mrb[53].mxu1  ;;  %v2955_v29 = vld [vmem:[#allocation10_spill] sm:$0xff]  ;;  %v2956_v51 = vld [vmem:[#allocation19_spill] sm:$0xff] }
 0x624   :  { %v1197_v16 = vadd.f32 %v1150_v13, %v2951_v15  ;;  %v1199_v20 = vadd.f32 %v1191_v14, %v2952_v18  ;;  %v1152_v44 = vpop.f32.mrb[22].mxu0  ;;  %v1193_v22 = vpop.f32.mrb[54].mxu1 }
 0x625   :  { %v1757_v12 = vmul.f32 -1.442695, %v1196_v43  ;;  %v1153_v24 = vpop.f32.mrb[23].mxu0  ;;  %v1194_v26 = vpop.f32.mrb[55].mxu1 }
 0x626   :  { %v1758_v27 = vmul.f32 -1.442695, %v1197_v16  ;;  %v1759_v28 = vmul.f32 -1.442695, %v1199_v20 }
 0x627   :  { %1964 = vpow2.f32 %v1757_v12 }
 0x628   :  { %1966 = vpow2.f32 %v1758_v27 }
 0x629   :  { %1968 = vpow2.f32 %v1759_v28 }
 0x62a   :  { %1970 = vtanh.f32 %v1198_v6 }
 0x631   :  { %v1965_v5 = vpop.eup %1964 }
 0x632   :  { %v1967_v52 = vpop.eup %1966  ;;  %v1203_v46 = vadd.f32 1.0, %v1965_v5 }
 0x633   :  { %v1209_v17 = vadd.f32 1.0, %v1967_v52  ;;  %v1969_v21 = vpop.eup %1968 }
 0x634   :  { %1972 = vrcp.f32 %v1203_v46  ;;  %v1971_v55 = vpop.eup %1970  ;;  %v1216_v49 = vadd.f32 1.0, %v1969_v21 }
 0x635   :  { %1974 = vrcp.f32 %v1209_v17 }
 0x636   :  { %1976 = vrcp.f32 %v1216_v49  ;;  %v1476_v49 = vpack.c.bf16 %v2500_v25, %v2454_v7  ;;  %v1880_v7 = vld [vmem:[%s2917_s4 + $0x20] sm:$0xff]   ;;  %v1881_v25 = vld [vmem:[%s2917_s4 + $0x28] sm:$0xff]  }
 0x63e   :  { %v1973_v47 = vpop.eup %1972 }
 0x63f   :  { %v1975_v23 = vpop.eup %1974  ;;  %v1220_v57 = vmul.f32 %v1973_v47, %v1971_v55 }
 0x640   :  { %v1219_v60 = vmul.f32 %v1975_v23, %v2655_v19  ;;  %v1977_v2 = vpop.eup %1976  ;;  %v2054_v19 = vld [vmem:[%s2914_s2 + $0x8c] ss:$16 sps:$4 sm:$0xff]  }
 0x642   :  { %v2763_v10 = vadd.f32 %v1220_v57, %v1219_v60  ;;  %v1877_v57 = vld [vmem:[%s2917_s4 + $0x8] sm:$0xff]   ;;  %v1878_v60 = vld [vmem:[%s2917_s4 + $0x10] sm:$0xff]  }
 0x644   :  { %1978 = vtanh.f32 %v2763_v10 }
 0x64e   :  { %v1979_v9 = vpop.eup %1978 }
 0x64f   :  { %v2766_v59 = vmul.f32 %v1979_v9, %v1977_v2  ;;  %v1882_v2 = vld [vmem:[%s2917_s4 + $0x30] sm:$0xff]   ;;  %v1883_v9 = vld [vmem:[%s2917_s4 + $0x38] sm:$0xff]  }
 0x651   :  { %v1233_v58 = vpack.c.bf16 %v2766_v59, %v2766_v59 }
 0x653   :  { %1267 = vmatmul.mubr.bf16.vlgmr.msra.gmra.mrb[24].mxu0 %v1233_v58  ;;  %1308 = vmatmul.mubr.bf16.vlgmr.msra.gmra.mrb[56].mxu1 %v1233_v58  ;;  %v1477_v58 = vpack.c.bf16 %v2592_v4, %v2546_v62 }
 0x654   :  { %1355 = vmatpush1.bf16.msra.mxu0 %v2599_v8  ;;  %1396 = vmatpush1.bf16.msra.mxu1 %v2047_v63  ;;  %v2049_v8 = vld [vmem:[%s2914_s2 + $0x28] ss:$16 sps:$4 sm:$0xff]   ;;  %v1478_v63 = vpack.c.bf16 %v2766_v59, %v2658_v54 }
 0x655   :  { %1356 = vmatprep.subr.bf16.mxu0 %v2606_v48  ;;  %1397 = vmatprep.subr.bf16.mxu1 %v2048_v53  ;;  %v2050_v48 = vld [vmem:[%s2914_s2 + $0x4c] ss:$16 sps:$4 sm:$0xff]  }
 0x656   :  { %1386 = vmatprep.mubr.bf16.mxu0 %v2942_v3  ;;  %1427 = vmatprep.mubr.bf16.mxu1 %v2942_v3  ;;  %v2051_v3 = vld [vmem:[%s2914_s2 + $0x48] ss:$16 sps:$4 sm:$0xff]  }
 0x658   :  { %1357 = vmatpush1.bf16.msra.mxu0 %v2615_v56  ;;  %1398 = vmatpush1.bf16.msra.mxu1 %v2049_v8  ;;  %v2052_v56 = vld [vmem:[%s2914_s2 + $0x6c] ss:$16 sps:$4 sm:$0xff]  }
 0x659   :  { %1358 = vmatprep.subr.bf16.mxu0 %v2673_v11  ;;  %1399 = vmatprep.subr.bf16.mxu1 %v2050_v48  ;;  %v2058_v11 = vld [vmem:[%s2914_s2 + $0xcc] ss:$16 sps:$4 sm:$0xff]  }
 0x65a   :  { %v2957_v48 = vld [vmem:[#allocation11_spill] sm:$0xff] }
 0x65c   :  { %1359 = vmatpush1.bf16.msra.mxu0 %v2680_v30  ;;  %1400 = vmatpush1.bf16.msra.mxu1 %v2051_v3  ;;  %v2059_v30 = vld [vmem:[%s2914_s2 + $0xc8] ss:$16 sps:$4 sm:$0xff]  }
 0x65d   :  { %1360 = vmatprep.subr.bf16.mxu0 %v2687_v31  ;;  %1401 = vmatprep.subr.bf16.mxu1 %v2052_v56  ;;  %v2060_v31 = vld [vmem:[%s2914_s2 + $0xec] ss:$16 sps:$4 sm:$0xff]   ;;  %v2958_v56 = vld [vmem:[#allocation20_spill] sm:$0xff] }
 0x660   :  { %1361 = vmatpush1.bf16.msra.mxu0 %v2694_v32  ;;  %1402 = vmatpush1.bf16.msra.mxu1 %v2053_v61  ;;  %v2061_v32 = vld [vmem:[%s2914_s2 + $0xe8] ss:$16 sps:$4 sm:$0xff]  }
 0x661   :  { %1362 = vmatprep.subr.bf16.mxu0 %v2701_v33  ;;  %1403 = vmatprep.subr.bf16.mxu1 %v2054_v19  ;;  %v1876_v33 = vld [vmem:[%s2917_s4] sm:$0xff]  }
 0x664   :  { %1363 = vmatpush1.bf16.msra.mxu0 %v2708_v34  ;;  %1404 = vmatpush1.bf16.msra.mxu1 %v2055_v0 }
 0x665   :  { %1364 = vmatprep.subr.bf16.mxu0 %v2715_v35  ;;  %1405 = vmatprep.subr.bf16.mxu1 %v2056_v45  ;;  %v2959_v45 = vld [vmem:[#allocation12_spill] sm:$0xff] }
 0x668   :  { %1365 = vmatpush1.bf16.msra.mxu0 %v2722_v36  ;;  %1406 = vmatpush1.bf16.msra.mxu1 %v2057_v50  ;;  %v2953_v36 = vld [vmem:[#allocation9_spill] sm:$0xff] }
 0x669   :  { %1366 = vmatprep.subr.bf16.mxu0 %v2729_v37  ;;  %1407 = vmatprep.subr.bf16.mxu1 %v2058_v11  ;;  %v2960_v11 = vld [vmem:[#allocation21_spill] sm:$0xff] }
 0x66c   :  { %1367 = vmatpush1.bf16.msra.mxu0 %v2736_v38  ;;  %1408 = vmatpush1.bf16.msra.mxu1 %v2059_v30  ;;  %v2954_v38 = vld [vmem:[#allocation18_spill] sm:$0xff] }
 0x66d   :  { %1368 = vmatprep.subr.bf16.mxu0 %v2743_v39  ;;  %1409 = vmatprep.subr.bf16.mxu1 %v2060_v31 }
 0x670   :  { %1369 = vmatpush1.bf16.msra.mxu0 %v2750_v40  ;;  %1410 = vmatpush1.bf16.msra.mxu1 %v2061_v32 }
 0x671   :  { %1787 = vmatprep.subr.bf16.mxu0 %v1876_v33 }
 0x726   :  { %v1268_v34 = vpop.f32.mrb[24].mxu0  ;;  %v1309_v35 = vpop.f32.mrb[56].mxu1 }
 0x727   :  { %v1316_v37 = vadd.f32 %v1268_v34, %v2953_v36  ;;  %v1318_v39 = vadd.f32 %v1309_v35, %v2954_v38  ;;  %v1270_v41 = vpop.f32.mrb[25].mxu0  ;;  %v1311_v42 = vpop.f32.mrb[57].mxu1 }
 0x728   :  { %v1317_v40 = vadd.f32 %v1270_v41, %v2955_v29  ;;  %v1319_v43 = vadd.f32 %v1311_v42, %v2956_v51  ;;  %v1272_v1 = vpop.f32.mrb[26].mxu0  ;;  %v1313_v6 = vpop.f32.mrb[58].mxu1 }
 0x729   :  { %v1760_v13 = vmul.f32 -1.442695, %v1316_v37  ;;  %v1273_v14 = vpop.f32.mrb[27].mxu0  ;;  %v1314_v15 = vpop.f32.mrb[59].mxu1 }
 0x72a   :  { %v1761_v16 = vmul.f32 -1.442695, %v1317_v40  ;;  %v1762_v18 = vmul.f32 -1.442695, %v1319_v43 }
 0x72b   :  { %1980 = vpow2.f32 %v1760_v13 }
 0x72c   :  { %1982 = vpow2.f32 %v1761_v16 }
 0x72d   :  { %1984 = vpow2.f32 %v1762_v18 }
 0x72e   :  { %1986 = vtanh.f32 %v1318_v39 }
 0x735   :  { %v1981_v20 = vpop.eup %1980 }
 0x736   :  { %v1983_v44 = vpop.eup %1982  ;;  %v1323_v22 = vadd.f32 1.0, %v1981_v20 }
 0x737   :  { %v1329_v12 = vadd.f32 1.0, %v1983_v44  ;;  %v1985_v24 = vpop.eup %1984  ;;  %v1766_v44 = vld [vmem:[%s2920_s5] ss:$0 sm:$0xff] }
 0x738   :  { %1988 = vrcp.f32 %v1323_v22  ;;  %v1987_v26 = vpop.eup %1986  ;;  %v1336_v52 = vadd.f32 1.0, %v1985_v24 }
 0x739   :  { %1990 = vrcp.f32 %v1329_v12 }
 0x73a   :  { %1992 = vrcp.f32 %v1336_v52 }
 0x742   :  { %v1989_v27 = vpop.eup %1988 }
 0x743   :  { %v1991_v28 = vpop.eup %1990  ;;  %v1340_v5 = vmul.f32 %v1989_v27, %v1987_v26 }
 0x744   :  { %v1339_v46 = vmul.f32 %v1991_v28, %v2763_v10  ;;  %v1993_v21 = vpop.eup %1992  ;;  %v1879_v10 = vld [vmem:[%s2917_s4 + $0x18] sm:$0xff]  }
 0x746   :  { %v2840_v17 = vadd.f32 %v1340_v5, %v1339_v46 }
 0x748   :  { %1994 = vtanh.f32 %v2840_v17 }
 0x752   :  { %v1995_v55 = vpop.eup %1994 }
 0x753   :  { %v2843_v47 = vmul.f32 %v1995_v55, %v1993_v21 }
 0x755   :  { %v1353_v23 = vpack.c.bf16 %v2843_v47, %v2843_v47 }
 0x757   :  { %1387 = vmatmul.mubr.bf16.vlgmr.msra.gmra.mrb[28].mxu0 %v1353_v23  ;;  %1428 = vmatmul.mubr.bf16.vlgmr.msra.gmra.mrb[60].mxu1 %v1353_v23 }
 0x758   :  { %1788 = vmatpush3.bf16.msra.mxu0 %v1876_v33  ;;  %1803 = vmatprep.mubr.bf16.mxu0 %v1476_v49 }
 0x759   :  { %1789 = vmatprep.subr.bf16.mxu0 %v1877_v57 }
 0x75c   :  { %1790 = vmatpush3.bf16.msra.mxu0 %v1877_v57 }
 0x75d   :  { %1791 = vmatprep.subr.bf16.mxu0 %v1878_v60 }
 0x760   :  { %1792 = vmatpush3.bf16.msra.mxu0 %v1878_v60 }
 0x761   :  { %1793 = vmatprep.subr.bf16.mxu0 %v1879_v10 }
 0x764   :  { %1794 = vmatpush3.bf16.msra.mxu0 %v1879_v10 }
 0x765   :  { %1795 = vmatprep.subr.bf16.mxu0 %v1880_v7 }
 0x768   :  { %1796 = vmatpush3.bf16.msra.mxu0 %v1880_v7 }
 0x769   :  { %1797 = vmatprep.subr.bf16.mxu0 %v1881_v25 }
 0x76c   :  { %1798 = vmatpush3.bf16.msra.mxu0 %v1881_v25 }
 0x76d   :  { %1799 = vmatprep.subr.bf16.mxu0 %v1882_v2 }
 0x770   :  { %1800 = vmatpush3.bf16.msra.mxu0 %v1882_v2 }
 0x771   :  { %1801 = vmatprep.subr.bf16.mxu0 %v1883_v9 }
 0x774   :  { %1802 = vmatpush3.bf16.msra.mxu0 %v1883_v9 }
 0x777   :  { %1804 = vmatmul.mubr.bf16.vlgmr.msra.gmra.mrb[32].mxu0 %v1477_v58 }
 0x778   :  { %1807 = vmatprep.mubr.bf16.mxu0 %v1478_v63 }
 0x82a   :  { %v1388_v53 = vpop.f32.mrb[28].mxu0  ;;  %v1429_v8 = vpop.f32.mrb[60].mxu1 }
 0x82b   :  { %v1436_v3 = vadd.f32 %v1388_v53, %v2957_v48  ;;  %v1438_v61 = vadd.f32 %v1429_v8, %v2958_v56  ;;  %v1390_v19 = vpop.f32.mrb[29].mxu0  ;;  %v1431_v0 = vpop.f32.mrb[61].mxu1 }
 0x82c   :  { %v1437_v50 = vadd.f32 %v1390_v19, %v2959_v45  ;;  %v1439_v30 = vadd.f32 %v1431_v0, %v2960_v11  ;;  %v1392_v31 = vpop.f32.mrb[30].mxu0  ;;  %v1433_v32 = vpop.f32.mrb[62].mxu1 }
 0x82d   :  { %v1763_v62 = vmul.f32 -1.442695, %v1436_v3  ;;  %v1393_v4 = vpop.f32.mrb[31].mxu0  ;;  %v1434_v33 = vpop.f32.mrb[63].mxu1 }
 0x82e   :  { %v1764_v54 = vmul.f32 -1.442695, %v1437_v50  ;;  %v1765_v59 = vmul.f32 -1.442695, %v1439_v30 }
 0x82f   :  { %1996 = vpow2.f32 %v1763_v62 }
 0x830   :  { %1998 = vpow2.f32 %v1764_v54 }
 0x831   :  { %2000 = vpow2.f32 %v1765_v59 }
 0x832   :  { %2002 = vtanh.f32 %v1438_v61 }
 0x839   :  { %v1997_v34 = vpop.eup %1996 }
 0x83a   :  { %v1999_v35 = vpop.eup %1998  ;;  %v1443_v36 = vadd.f32 1.0, %v1997_v34 }
 0x83b   :  { %v1449_v37 = vadd.f32 1.0, %v1999_v35  ;;  %v2001_v38 = vpop.eup %2000 }
 0x83c   :  { %2004 = vrcp.f32 %v1443_v36  ;;  %v2003_v39 = vpop.eup %2002  ;;  %v1456_v40 = vadd.f32 1.0, %v2001_v38 }
 0x83d   :  { %2006 = vrcp.f32 %v1449_v37 }
 0x83e   :  { %2008 = vrcp.f32 %v1456_v40 }
 0x846   :  { %v2005_v41 = vpop.eup %2004 }
 0x847   :  { %v2007_v42 = vpop.eup %2006  ;;  %v1460_v29 = vmul.f32 %v2005_v41, %v2003_v39 }
 0x848   :  { %v1459_v51 = vmul.f32 %v2007_v42, %v2840_v17  ;;  %v2009_v15 = vpop.eup %2008 }
 0x84a   :  { %v1461_v43 = vadd.f32 %v1460_v29, %v1459_v51  ;;  %v1805_v1 = vpop.f32.mrb[32].mxu0 }
 0x84b   :  { %v1585_v6 = vpop.f32.mrb[33].mxu0  ;;  %v1594_v12 = vadd.f32 %v1805_v1, %v1766_v44 }
 0x84c   :  { %1467 = vst [vmem:[%s2918_s8] sm:$0xff] %v1461_v43  ;;  %v1806_v13 = vpop.f32.mrb[34].mxu0  ;;  %2010 = vtanh.f32 %v1461_v43  ;;  %v1586_v27 = vadd.f32 %v1766_v44, %v1585_v6 }
 0x84d   :  { %v1588_v14 = vpop.f32.mrb[35].mxu0  ;;  %v1597_v52 = vadd.f32 %v1806_v13, %v1766_v44 }
 0x84e   :  { %v1589_v55 = vadd.f32 %v1766_v44, %v1588_v14 }
 0x856   :  { %v2011_v16 = vpop.eup %2010 }
 0x857   :  { %v1463_v18 = vmul.f32 %v2011_v16, %v2009_v15 }
 0x859   :  { %1466 = vst [vmem:[%s2919_s7] sm:$0xff] %v1463_v18  ;;  %v1479_v20 = vpack.c.bf16 %v1463_v18, %v2843_v47 }
 0x85b   :  { %1808 = vmatmul.mubr.bf16.gmra.mrb[36].mxu0 %v1479_v20 }
 0x92e   :  { %v1809_v22 = vpop.f32.mrb[36].mxu0 }
 0x92f   :  { %v1610_v24 = vadd.f32 %v1809_v22, %v1766_v44  ;;  %v1601_v26 = vpop.f32.mrb[37].mxu0 }
 0x930   :  { %v1602_v28 = vadd.f32 %v1766_v44, %v1601_v26  ;;  %v1810_v5 = vpop.f32.mrb[38].mxu0 }
 0x931   :  { %v1618_v46 = vmax.f32 %v1594_v12, %v1610_v24  ;;  %v1613_v17 = vadd.f32 %v1810_v5, %v1766_v44  ;;  %v1604_v21 = vpop.f32.mrb[39].mxu0 }
 0x932   :  { %v1616_v23 = vmax.f32 %v1586_v27, %v1602_v28  ;;  %v1605_v57 = vadd.f32 %v1766_v44, %v1604_v21 }
 0x933   :  { %v1619_v47 = vmax.f32 %v1597_v52, %v1613_v17 }
 0x934   :  { %v1617_v49 = vmax.f32 %v1589_v55, %v1605_v57 }
 0x935   :  { %v1621_v60 = vmax.f32 %v1618_v46, %v1619_v47 }
 0x936   :  { %v1620_v10 = vmax.f32 %v1616_v23, %v1617_v49 }
 0x938   :  { %v1622_v7 = vmax.f32 %v1620_v10, %v1621_v60 }
 0x93a   :  { %v1623_v25 = vsub.f32 %v1586_v27, %v1622_v7  ;;  %v1624_v2 = vsub.f32 %v1589_v55, %v1622_v7  ;;  %v1625_v9 = vsub.f32 %v1594_v12, %v1622_v7  ;;  %v1626_v58 = vsub.f32 %v1597_v52, %v1622_v7 }
 0x93b   :  { %v1627_v63 = vsub.f32 %v1602_v28, %v1622_v7  ;;  %v1628_v53 = vsub.f32 %v1605_v57, %v1622_v7  ;;  %v1629_v8 = vsub.f32 %v1610_v24, %v1622_v7  ;;  %v1630_v48 = vsub.f32 %v1613_v17, %v1622_v7 }
 0x93c   :  { %v1631_v3 = vmul.f32 1.442695, %v1623_v25  ;;  %v1633_v56 = vmul.f32 1.442695, %v1624_v2  ;;  %v1635_v61 = vmul.f32 1.442695, %v1625_v9 }
 0x93d   :  { %v1637_v19 = vmul.f32 1.442695, %v1626_v58  ;;  %v1639_v0 = vmul.f32 1.442695, %v1627_v63  ;;  %v1641_v45 = vmul.f32 1.442695, %v1628_v53 }
 0x93e   :  { %2012 = vpow2.f32 %v1631_v3  ;;  %v1643_v50 = vmul.f32 1.442695, %v1629_v8  ;;  %v1645_v11 = vmul.f32 1.442695, %v1630_v48 }
 0x93f   :  { %2014 = vpow2.f32 %v1633_v56 }
 0x940   :  { %2016 = vpow2.f32 %v1635_v61 }
 0x941   :  { %2018 = vpow2.f32 %v1637_v19 }
 0x942   :  { %2020 = vpow2.f32 %v1639_v0 }
 0x943   :  { %2022 = vpow2.f32 %v1641_v45 }
 0x944   :  { %2024 = vpow2.f32 %v1643_v50 }
 0x945   :  { %2026 = vpow2.f32 %v1645_v11 }
 0x948   :  { %v2013_v30 = vpop.eup %2012 }
 0x949   :  { %v2015_v31 = vpop.eup %2014 }
 0x94a   :  { %v1647_v32 = vadd.f32 %v2015_v31, %v2013_v30  ;;  %v2017_v62 = vpop.eup %2016 }
 0x94b   :  { %v2019_v33 = vpop.eup %2018 }
 0x94c   :  { %v1648_v4 = vadd.f32 %v2017_v62, %v1647_v32  ;;  %v2021_v59 = vpop.eup %2020 }
 0x94d   :  { %v2023_v35 = vpop.eup %2022 }
 0x94e   :  { %v1649_v54 = vadd.f32 %v2019_v33, %v1648_v4  ;;  %v2025_v37 = vpop.eup %2024 }
 0x94f   :  { %v2027_v39 = vpop.eup %2026 }
 0x950   :  { %v1650_v34 = vadd.f32 %v2021_v59, %v1649_v54 }
 0x952   :  { %v1651_v36 = vadd.f32 %v2023_v35, %v1650_v34 }
 0x954   :  { %v1652_v38 = vadd.f32 %v2025_v37, %v1651_v36 }
 0x956   :  { %v1653_v41 = vadd.f32 %v2027_v39, %v1652_v38 }
 0x958   :  { %2028 = vrcp.f32 %v1653_v41 }
 0x962   :  { %v2029_v42 = vpop.eup %2028 }
 0x963   :  { %v1655_v29 = vmul.f32 %v2029_v42, %v2013_v30  ;;  %v1656_v40 = vmul.f32 %v2029_v42, %v2015_v31  ;;  %v1657_v51 = vmul.f32 %v2029_v42, %v2017_v62  ;;  %v1658_v43 = vmul.f32 %v2029_v42, %v2019_v33 }
 0x964   :  { %v1659_v1 = vmul.f32 %v2029_v42, %v2021_v59  ;;  %v1660_v6 = vmul.f32 %v2029_v42, %v2023_v35  ;;  %v1661_v13 = vmul.f32 %v2029_v42, %v2025_v37  ;;  %v1662_v14 = vmul.f32 %v2029_v42, %v2027_v39 }
 0x965   :  { %1663 = vst [vmem:[%s2921_s6] sm:$0xff] %v1655_v29  ;;  %1664 = vst [vmem:[%s2921_s6 + $0x8] sm:$0xff] %v1656_v40 }
 0x966   :  { %1665 = vst [vmem:[%s2921_s6 + $0x10] sm:$0xff] %v1657_v51  ;;  %1666 = vst [vmem:[%s2921_s6 + $0x18] sm:$0xff] %v1658_v43 }
 0x967   :  { %1667 = vst [vmem:[%s2921_s6 + $0x20] sm:$0xff] %v1659_v1  ;;  %1668 = vst [vmem:[%s2921_s6 + $0x28] sm:$0xff] %v1660_v6 }
 0x968   :  { %1669 = vst [vmem:[%s2921_s6 + $0x30] sm:$0xff] %v1661_v13  ;;  %1670 = vst [vmem:[%s2921_s6 + $0x38] sm:$0xff] %v1662_v14 }

</bundles_post_ra>
